<compile_context>
chip_gen: v7x
topology: tpu7x:2x2x1
jax: 0.10.0
libtpu: 0.0.40
codegen_flags: <defaults>
</compile_context>

<pallas_src>
import functools

import numpy as np

import jax
import jax.numpy as jnp
from jax.experimental import pallas as pl
from jax.experimental.pallas import tpu as pltpu


# ---------------------------------------------------------------------------
# In-kernel helper: 3x3 im2col in lane-flattened layout (no relayouts).
# ---------------------------------------------------------------------------
def _im2col_lane(x_flat, mask_ref, dst_ref, row0, *, W):
    """Write the 3x3 (pad=1) im2col patch matrix of x_flat into dst_ref rows
    [row0, row0 + 9*C).

    x_flat:   (C, H*W) value, spatial flattened on the lane axis.
    mask_ref: (9, H*W) precomputed 0/1 border masks (1 inside the image for
              the shifted tap, 0 where the 3x3 window falls off the border).
    Tap t = ky*3+kx holds the input shifted by (ky-1, kx-1): a lane roll
    (XLU slot) times the mask (VPU slot) -- no per-tap slices or reshapes.
    """
    C, HW = x_flat.shape
    for ky in range(3):
        for kx in range(3):
            t = ky * 3 + kx
            d = (ky - 1) * W + (kx - 1)
            if d == 0:
                shifted = x_flat                       # center tap: no shift
            else:
                # shifted[p] = x_flat[p + d], zeroed outside the image border.
                shifted = pltpu.roll(x_flat, (-d) % HW, 1) * mask_ref[t:t + 1, :]
            dst_ref[row0 + t * C:row0 + (t + 1) * C, :] = (
                shifted.astype(dst_ref.dtype))


# ---------------------------------------------------------------------------
# Fused UpResNet kernel (one batch element per grid step).
# ---------------------------------------------------------------------------
def upresnet_kernel(x1_ref, x2_ref, wt_ref, bt_ref, scat_ref, mask_ref,
                    w1_ref, b1_ref, w2_ref, b2_ref,
                    o_ref, p1_scr, p2_scr, *, W):
    # x1_ref:   (1, C1, H1*W1)      deep feature, spatial flattened on lanes
    # x2_ref:   (1, C2, H*W)        skip feature
    # wt_ref:   (4, C1, C1)         ConvTranspose2d per-tap channel mix (co,ci)
    # bt_ref:   (C1, 1)             ConvTranspose2d bias
    # scat_ref: (4, H1*W1, H*W)     fixed 0/1 interleave + pad/crop scatter
    # mask_ref: (9, H*W)            precomputed 3x3 border masks
    # w1_ref:   (Cmid, 9*Cin) bf16  conv1 weights*BN-scale, im2col layout
    #                               (columns: 9 taps of x2, then 9 taps of up)
    # w2_ref:   (Cout, 9*Cmid) bf16 conv2 weights*BN-scale, im2col layout
    # b*_ref:   (C, 1)              folded BatchNorm shifts
    # o_ref:    (1, Cout, H*W)      lane-dense output block
    C1 = x1_ref.shape[1]
    C2 = x2_ref.shape[1]
    HW = o_ref.shape[2]

    # --- ConvTranspose2d(k=2, s=2) + bias; the 2x spatial interleave and the
    #     F.pad placement / crop are folded into the fixed scatter matmuls. ---
    x1f = x1_ref[0]                                           # (C1, H1*W1)
    ups = jnp.zeros((C1, HW), jnp.float32)
    for t in range(4):                                        # 2x2 taps
        up_t = jnp.dot(wt_ref[t], x1f,
                       preferred_element_type=jnp.float32)    # (C1, H1*W1)
        up_t = up_t + bt_ref[...]                             # + bias[co]
        ups = ups + jnp.dot(up_t, scat_ref[t],
                            preferred_element_type=jnp.float32)

    # --- conv1 3x3 (no bias): im2col with the channel concat [x2, up(x1)]
    #     folded into the patch-matrix row layout; single MXU matmul, then
    #     folded-BN shift + ReLU. ---
    _im2col_lane(x2_ref[0], mask_ref, p1_scr, 0, W=W)          # x2 tap block
    _im2col_lane(ups, mask_ref, p1_scr, 9 * C2, W=W)           # up(x1) block
    h = jnp.dot(w1_ref[...], p1_scr[...].astype(jnp.bfloat16),
                preferred_element_type=jnp.float32)            # (Cmid, H*W)
    h = jnp.maximum(h + b1_ref[...], 0.0)
    # TODO(synk): Dropout2d is identity at inference time (no RNG applied).

    # --- conv2 3x3 (no bias): single im2col matmul + folded BN + ReLU. ---
    _im2col_lane(h, mask_ref, p2_scr, 0, W=W)
    y = jnp.dot(w2_ref[...], p2_scr[...].astype(jnp.bfloat16),
                preferred_element_type=jnp.float32)            # (Cout, H*W)
    y = jnp.maximum(y + b2_ref[...], 0.0)
    o_ref[0] = y


# ---------------------------------------------------------------------------
# Wrapper: parameter packing (PyTorch layouts), scatter/mask tables, call.
# ---------------------------------------------------------------------------
def _fold_bn(gamma, beta, mean, var, eps=1e-5):
    scale = gamma / jnp.sqrt(var + eps)
    shift = beta - mean * scale
    return scale[:, None], shift[:, None]


def _make_scatter(H1, W1, H2, W2, py, px):
    """(4, H1*W1, H2*W2) 0/1 matrices: stride-2 2x2 interleave + pad/crop."""
    scat = np.zeros((4, H1 * W1, H2 * W2), np.float32)
    for dy in range(2):
        for dx in range(2):
            t = dy * 2 + dx
            for i in range(H1):
                ty = 2 * i + dy + py
                if ty < 0 or ty >= H2:
                    continue
                for j in range(W1):
                    tx = 2 * j + dx + px
                    if 0 <= tx < W2:
                        scat[t, i * W1 + j, ty * W2 + tx] = 1.0
    return jnp.asarray(scat)


def _make_tap_masks(H, W):
    """(9, H*W) 0/1 masks: tap t=ky*3+kx is valid where the shifted position
    (y+ky-1, x+kx-1) lies inside the image (padding=1 zeros elsewhere)."""
    yy, xx = np.meshgrid(np.arange(H), np.arange(W), indexing="ij")
    yy = yy.reshape(-1)
    xx = xx.reshape(-1)
    masks = np.zeros((9, H * W), np.float32)
    for ky in range(3):
        for kx in range(3):
            dy, dx = ky - 1, kx - 1
            valid = ((yy + dy >= 0) & (yy + dy < H) &
                     (xx + dx >= 0) & (xx + dx < W))
            masks[ky * 3 + kx] = valid.astype(np.float32)
    return jnp.asarray(masks)


def upresnet_forward(x1, x2, params):
    """UpResNet.forward (inference). x1, x2: NCHW float32 -> NCHW float32."""
    N, C1, H1, W1 = x1.shape
    _, C2, H2, W2 = x2.shape
    HW1, HW2 = H1 * W1, H2 * W2
    Cin = C1 + C2
    Cmid = params["w1"].shape[0]
    Cout = params["w2"].shape[0]

    # ConvTranspose2d weight, PyTorch layout (C_in, C_out, 2, 2) -> (4, co, ci).
    wt = params["wt"]
    wt_packed = jnp.stack(
        [wt[:, :, dy, dx].T for dy in range(2) for dx in range(2)], axis=0)
    bt = params["bt"][:, None]

    # F.pad placement (positive diff pads with zeros, negative diff crops),
    # folded into the scatter matrices (built at trace time, static shapes).
    diffY = H2 - 2 * H1
    diffX = W2 - 2 * W1
    scat = _make_scatter(H1, W1, H2, W2, diffY // 2, diffX // 2)

    # Precomputed 3x3 border masks for the im2col lane rolls.
    masks = _make_tap_masks(H2, W2)

    # Folded BatchNorm: scale multiplied into the weights at trace time,
    # shift stays as the in-kernel epilogue add.
    s1, b1 = _fold_bn(params["g1"], params["b1"], params["m1"], params["v1"])
    s2, b2 = _fold_bn(params["g2"], params["b2"], params["m2"], params["v2"])

    # Conv2d weights, PyTorch layout (Cout, Cin, 3, 3) -> im2col (Cout, 9*Cin).
    # conv1 columns are reordered to [9 taps of x2-channels, 9 taps of
    # x1_up-channels] so the channel concat is purely a patch-row layout.
    w1 = params["w1"]
    w1_x2 = jnp.transpose(w1[:, :C2], (0, 2, 3, 1)).reshape(Cmid, 9 * C2)
    w1_up = jnp.transpose(w1[:, C2:], (0, 2, 3, 1)).reshape(Cmid, 9 * C1)
    w1m = (jnp.concatenate([w1_x2, w1_up], axis=1) * s1).astype(jnp.bfloat16)
    w2m = (jnp.transpose(params["w2"], (0, 2, 3, 1)).reshape(Cout, 9 * Cmid)
           * s2).astype(jnp.bfloat16)

    # NCHW -> (N, C, H*W): free row-major reshapes, no transposes anywhere.
    x1f = x1.reshape(N, C1, HW1)
    x2f = x2.reshape(N, C2, HW2)

    kernel = functools.partial(upresnet_kernel, W=W2)
    full3 = lambda n: (0, 0, 0)
    full2 = lambda n: (0, 0)
    out_flat = pl.pallas_call(
        kernel,
        out_shape=jax.ShapeDtypeStruct((N, Cout, HW2), jnp.float32),
        grid=(N,),
        in_specs=[
            pl.BlockSpec((1, C1, HW1), lambda n: (n, 0, 0)),
            pl.BlockSpec((1, C2, HW2), lambda n: (n, 0, 0)),
            pl.BlockSpec((4, C1, C1), full3),
            pl.BlockSpec((C1, 1), full2),
            pl.BlockSpec((4, HW1, HW2), full3),
            pl.BlockSpec((9, HW2), full2),
            pl.BlockSpec((Cmid, 9 * Cin), full2),
            pl.BlockSpec((Cmid, 1), full2),
            pl.BlockSpec((Cout, 9 * Cmid), full2),
            pl.BlockSpec((Cout, 1), full2),
        ],
        out_specs=pl.BlockSpec((1, Cout, HW2), lambda n: (n, 0, 0)),
        scratch_shapes=[
            pltpu.VMEM((9 * Cin, HW2), jnp.float32),    # im2col patches, conv1
            pltpu.VMEM((9 * Cmid, HW2), jnp.float32),   # im2col patches, conv2
        ],
        compiler_params=pltpu.CompilerParams(
            dimension_semantics=("parallel",)),
    )(x1f, x2f, wt_packed, bt, scat, masks, w1m, b1, w2m, b2)
    # TODO(synk): for realistic UNet sizes (C ~ 512+, large H*W) tile H*W into
    # lane strips and Cout into chunks (and set vmem_limit_bytes) so blocks
    # stay within v7x's 64 MiB VMEM; whole-image blocks are fine at this size.
    return out_flat.reshape(N, Cout, H2, W2)


def make_params(key, in_channels_1, in_channels_2, out_channels):
    """Deterministic synthetic parameters in PyTorch layouts."""
    cin = in_channels_1 + in_channels_2
    mid = out_channels                       # DoubleConv default mid=out
    k = jax.random.split(key, 12)
    wt = 0.1 * jax.random.normal(k[0], (in_channels_1, in_channels_1, 2, 2),
                                 jnp.float32)
    bt = 0.1 * jax.random.normal(k[1], (in_channels_1,), jnp.float32)
    w1 = 0.1 * jax.random.normal(k[2], (mid, cin, 3, 3), jnp.float32)
    w2 = 0.1 * jax.random.normal(k[3], (out_channels, mid, 3, 3), jnp.float32)
    g1 = 1.0 + 0.1 * jax.random.normal(k[4], (mid,), jnp.float32)
    b1 = 0.1 * jax.random.normal(k[5], (mid,), jnp.float32)
    m1 = 0.1 * jax.random.normal(k[6], (mid,), jnp.float32)
    v1 = jax.random.uniform(k[7], (mid,), jnp.float32, 0.5, 1.5)
    g2 = 1.0 + 0.1 * jax.random.normal(k[8], (out_channels,), jnp.float32)
    b2 = 0.1 * jax.random.normal(k[9], (out_channels,), jnp.float32)
    m2 = 0.1 * jax.random.normal(k[10], (out_channels,), jnp.float32)
    v2 = jax.random.uniform(k[11], (out_channels,), jnp.float32, 0.5, 1.5)
    return {"wt": wt, "bt": bt,
            "w1": w1, "g1": g1, "b1": b1, "m1": m1, "v1": v1,
            "w2": w2, "g2": g2, "b2": b2, "m2": m2, "v2": v2}


if __name__ == "__main__":
    # UpResNet(in_channels_1=4, in_channels_2=4, out_channels=4):
    #   x1: deep feature (2, 4, 8, 8)  -> ConvTranspose2d k2 s2 -> (2, 4, 16, 16)
    #   x2: skip feature (2, 4, 16, 16); concat -> (2, 8, 16, 16)
    #   DoubleConv(8, 4) -> (2, 4, 16, 16)
    in1, in2, cout = 4, 4, 4
    key = jax.random.PRNGKey(0)
    k_x1, k_x2, k_p = jax.random.split(key, 3)
    x1 = jax.random.normal(k_x1, (2, in1, 8, 8), jnp.float32)
    x2 = jax.random.normal(k_x2, (2, in2, 16, 16), jnp.float32)
    params = make_params(k_p, in1, in2, cout)

    fwd = jax.jit(upresnet_forward)
    out = jax.block_until_ready(fwd(x1, x2, params))
    assert out.shape == (2, cout, 16, 16), out.shape
    print("KERNEL_OK")
</pallas_src>

<mosaic_0001>
module attributes {stable_mosaic.version = 11 : i64} {
  func.func @upresnet_kernel(%arg0: i32, %arg1: memref<1x4x64xf32, #tpu.memory_space<vmem>>, %arg2: memref<1x4x256xf32, #tpu.memory_space<vmem>>, %arg3: memref<4x4x4xf32, #tpu.memory_space<vmem>>, %arg4: memref<4x1xf32, #tpu.memory_space<vmem>>, %arg5: memref<4x64x256xf32, #tpu.memory_space<vmem>>, %arg6: memref<9x256xf32, #tpu.memory_space<vmem>>, %arg7: memref<4x72xbf16, #tpu.memory_space<vmem>>, %arg8: memref<4x1xf32, #tpu.memory_space<vmem>>, %arg9: memref<4x36xbf16, #tpu.memory_space<vmem>>, %arg10: memref<4x1xf32, #tpu.memory_space<vmem>>, %arg11: memref<1x4x256xf32, #tpu.memory_space<vmem>>, %arg12: memref<72x256xf32, #tpu.memory_space<vmem>>, %arg13: memref<36x256xf32, #tpu.memory_space<vmem>>) attributes {dimension_semantics = [#tpu.dimension_semantics<parallel>], iteration_bounds = array<i64: 2>, scalar_prefetch = 0 : i64, scratch_operands = 2 : i64, tpu.core_type = #tpu.core_type<tc>, window_params = [{transform_indices = @transform_0, window_bounds = array<i64: 1, 4, 64>}, {transform_indices = @transform_1, window_bounds = array<i64: 1, 4, 256>}, {pipeline_mode = #tpu.pipeline_mode<synchronous>, transform_indices = @transform_2, window_bounds = array<i64: 4, 4, 4>}, {pipeline_mode = #tpu.pipeline_mode<synchronous>, transform_indices = @transform_3, window_bounds = array<i64: 4, 1>}, {pipeline_mode = #tpu.pipeline_mode<synchronous>, transform_indices = @transform_4, window_bounds = array<i64: 4, 64, 256>}, {pipeline_mode = #tpu.pipeline_mode<synchronous>, transform_indices = @transform_5, window_bounds = array<i64: 9, 256>}, {pipeline_mode = #tpu.pipeline_mode<synchronous>, transform_indices = @transform_6, window_bounds = array<i64: 4, 72>}, {pipeline_mode = #tpu.pipeline_mode<synchronous>, transform_indices = @transform_7, window_bounds = array<i64: 4, 1>}, {pipeline_mode = #tpu.pipeline_mode<synchronous>, transform_indices = @transform_8, window_bounds = array<i64: 4, 36>}, {pipeline_mode = #tpu.pipeline_mode<synchronous>, transform_indices = @transform_9, window_bounds = array<i64: 4, 1>}, {transform_indices = @transform_10, window_bounds = array<i64: 1, 4, 256>}]} {
    %c0 = arith.constant 0 : index
    %c0_0 = arith.constant 0 : index
    %c0_1 = arith.constant 0 : index
    %0 = vector.load %arg1[%c0, %c0_0, %c0_1] : memref<1x4x64xf32, #tpu.memory_space<vmem>>, vector<1x4x64xf32>
    %1 = vector.shape_cast %0 : vector<1x4x64xf32> to vector<4x64xf32>
    %cst = arith.constant 0.000000e+00 : f32
    %2 = vector.broadcast %cst : f32 to vector<4x256xf32>
    %c0_2 = arith.constant 0 : index
    %c0_3 = arith.constant 0 : index
    %c0_4 = arith.constant 0 : index
    %3 = vector.load %arg3[%c0_2, %c0_3, %c0_4] : memref<4x4x4xf32, #tpu.memory_space<vmem>>, vector<1x4x4xf32>
    %4 = vector.shape_cast %3 : vector<1x4x4xf32> to vector<4x4xf32>
    %cst_5 = arith.constant dense<0.000000e+00> : vector<4x64xf32>
    %5 = tpu.matmul %4, %1, %cst_5 {dimension_numbers = #tpu.dot_dimension_numbers<[1], [0], [0], [1], [0, 0, 1, 1], [], []>} : vector<4x4xf32>, vector<4x64xf32>, vector<4x64xf32> -> vector<4x64xf32>
    %c0_6 = arith.constant 0 : index
    %c0_7 = arith.constant 0 : index
    %6 = vector.load %arg4[%c0_6, %c0_7] : memref<4x1xf32, #tpu.memory_space<vmem>>, vector<4x1xf32>
    %7 = vector.broadcast %6 : vector<4x1xf32> to vector<4x64xf32>
    %8 = arith.addf %5, %7 : vector<4x64xf32>
    %c0_8 = arith.constant 0 : index
    %c0_9 = arith.constant 0 : index
    %c0_10 = arith.constant 0 : index
    %9 = vector.load %arg5[%c0_8, %c0_9, %c0_10] : memref<4x64x256xf32, #tpu.memory_space<vmem>>, vector<1x64x256xf32>
    %10 = vector.shape_cast %9 : vector<1x64x256xf32> to vector<64x256xf32>
    %cst_11 = arith.constant dense<0.000000e+00> : vector<4x256xf32>
    %11 = tpu.matmul %8, %10, %cst_11 {dimension_numbers = #tpu.dot_dimension_numbers<[1], [0], [0], [1], [0, 0, 1, 1], [], []>} : vector<4x64xf32>, vector<64x256xf32>, vector<4x256xf32> -> vector<4x256xf32>
    %12 = arith.addf %2, %11 : vector<4x256xf32>
    %c1 = arith.constant 1 : index
    %c0_12 = arith.constant 0 : index
    %c0_13 = arith.constant 0 : index
    %13 = vector.load %arg3[%c1, %c0_12, %c0_13] : memref<4x4x4xf32, #tpu.memory_space<vmem>>, vector<1x4x4xf32>
    %14 = vector.shape_cast %13 : vector<1x4x4xf32> to vector<4x4xf32>
    %cst_14 = arith.constant dense<0.000000e+00> : vector<4x64xf32>
    %15 = tpu.matmul %14, %1, %cst_14 {dimension_numbers = #tpu.dot_dimension_numbers<[1], [0], [0], [1], [0, 0, 1, 1], [], []>} : vector<4x4xf32>, vector<4x64xf32>, vector<4x64xf32> -> vector<4x64xf32>
    %c0_15 = arith.constant 0 : index
    %c0_16 = arith.constant 0 : index
    %16 = vector.load %arg4[%c0_15, %c0_16] : memref<4x1xf32, #tpu.memory_space<vmem>>, vector<4x1xf32>
    %17 = vector.broadcast %16 : vector<4x1xf32> to vector<4x64xf32>
    %18 = arith.addf %15, %17 : vector<4x64xf32>
    %c1_17 = arith.constant 1 : index
    %c0_18 = arith.constant 0 : index
    %c0_19 = arith.constant 0 : index
    %19 = vector.load %arg5[%c1_17, %c0_18, %c0_19] : memref<4x64x256xf32, #tpu.memory_space<vmem>>, vector<1x64x256xf32>
    %20 = vector.shape_cast %19 : vector<1x64x256xf32> to vector<64x256xf32>
    %cst_20 = arith.constant dense<0.000000e+00> : vector<4x256xf32>
    %21 = tpu.matmul %18, %20, %cst_20 {dimension_numbers = #tpu.dot_dimension_numbers<[1], [0], [0], [1], [0, 0, 1, 1], [], []>} : vector<4x64xf32>, vector<64x256xf32>, vector<4x256xf32> -> vector<4x256xf32>
    %22 = arith.addf %12, %21 : vector<4x256xf32>
    %c2 = arith.constant 2 : index
    %c0_21 = arith.constant 0 : index
    %c0_22 = arith.constant 0 : index
    %23 = vector.load %arg3[%c2, %c0_21, %c0_22] : memref<4x4x4xf32, #tpu.memory_space<vmem>>, vector<1x4x4xf32>
    %24 = vector.shape_cast %23 : vector<1x4x4xf32> to vector<4x4xf32>
    %cst_23 = arith.constant dense<0.000000e+00> : vector<4x64xf32>
    %25 = tpu.matmul %24, %1, %cst_23 {dimension_numbers = #tpu.dot_dimension_numbers<[1], [0], [0], [1], [0, 0, 1, 1], [], []>} : vector<4x4xf32>, vector<4x64xf32>, vector<4x64xf32> -> vector<4x64xf32>
    %c0_24 = arith.constant 0 : index
    %c0_25 = arith.constant 0 : index
    %26 = vector.load %arg4[%c0_24, %c0_25] : memref<4x1xf32, #tpu.memory_space<vmem>>, vector<4x1xf32>
    %27 = vector.broadcast %26 : vector<4x1xf32> to vector<4x64xf32>
    %28 = arith.addf %25, %27 : vector<4x64xf32>
    %c2_26 = arith.constant 2 : index
    %c0_27 = arith.constant 0 : index
    %c0_28 = arith.constant 0 : index
    %29 = vector.load %arg5[%c2_26, %c0_27, %c0_28] : memref<4x64x256xf32, #tpu.memory_space<vmem>>, vector<1x64x256xf32>
    %30 = vector.shape_cast %29 : vector<1x64x256xf32> to vector<64x256xf32>
    %cst_29 = arith.constant dense<0.000000e+00> : vector<4x256xf32>
    %31 = tpu.matmul %28, %30, %cst_29 {dimension_numbers = #tpu.dot_dimension_numbers<[1], [0], [0], [1], [0, 0, 1, 1], [], []>} : vector<4x64xf32>, vector<64x256xf32>, vector<4x256xf32> -> vector<4x256xf32>
    %32 = arith.addf %22, %31 : vector<4x256xf32>
    %c3 = arith.constant 3 : index
    %c0_30 = arith.constant 0 : index
    %c0_31 = arith.constant 0 : index
    %33 = vector.load %arg3[%c3, %c0_30, %c0_31] : memref<4x4x4xf32, #tpu.memory_space<vmem>>, vector<1x4x4xf32>
    %34 = vector.shape_cast %33 : vector<1x4x4xf32> to vector<4x4xf32>
    %cst_32 = arith.constant dense<0.000000e+00> : vector<4x64xf32>
    %35 = tpu.matmul %34, %1, %cst_32 {dimension_numbers = #tpu.dot_dimension_numbers<[1], [0], [0], [1], [0, 0, 1, 1], [], []>} : vector<4x4xf32>, vector<4x64xf32>, vector<4x64xf32> -> vector<4x64xf32>
    %c0_33 = arith.constant 0 : index
    %c0_34 = arith.constant 0 : index
    %36 = vector.load %arg4[%c0_33, %c0_34] : memref<4x1xf32, #tpu.memory_space<vmem>>, vector<4x1xf32>
    %37 = vector.broadcast %36 : vector<4x1xf32> to vector<4x64xf32>
    %38 = arith.addf %35, %37 : vector<4x64xf32>
    %c3_35 = arith.constant 3 : index
    %c0_36 = arith.constant 0 : index
    %c0_37 = arith.constant 0 : index
    %39 = vector.load %arg5[%c3_35, %c0_36, %c0_37] : memref<4x64x256xf32, #tpu.memory_space<vmem>>, vector<1x64x256xf32>
    %40 = vector.shape_cast %39 : vector<1x64x256xf32> to vector<64x256xf32>
    %cst_38 = arith.constant dense<0.000000e+00> : vector<4x256xf32>
    %41 = tpu.matmul %38, %40, %cst_38 {dimension_numbers = #tpu.dot_dimension_numbers<[1], [0], [0], [1], [0, 0, 1, 1], [], []>} : vector<4x64xf32>, vector<64x256xf32>, vector<4x256xf32> -> vector<4x256xf32>
    %42 = arith.addf %32, %41 : vector<4x256xf32>
    %c0_39 = arith.constant 0 : index
    %c0_40 = arith.constant 0 : index
    %c0_41 = arith.constant 0 : index
    %43 = vector.load %arg2[%c0_39, %c0_40, %c0_41] : memref<1x4x256xf32, #tpu.memory_space<vmem>>, vector<1x4x256xf32>
    %44 = vector.shape_cast %43 : vector<1x4x256xf32> to vector<4x256xf32>
    %c17_i32 = arith.constant 17 : i32
    %45 = tpu.dynamic_rotate %44 by %c17_i32 dim 1 : vector<4x256xf32>, i32 -> vector<4x256xf32>
    %c0_42 = arith.constant 0 : index
    %c0_43 = arith.constant 0 : index
    %46 = vector.load %arg6[%c0_42, %c0_43] : memref<9x256xf32, #tpu.memory_space<vmem>>, vector<1x256xf32>
    %47 = vector.broadcast %46 : vector<1x256xf32> to vector<4x256xf32>
    %48 = arith.mulf %45, %47 : vector<4x256xf32>
    %c0_44 = arith.constant 0 : index
    %c0_45 = arith.constant 0 : index
    %49 = vector.load %arg12[%c0_44, %c0_45] : memref<72x256xf32, #tpu.memory_space<vmem>>, vector<4x256xf32>
    tpu.vector_store %arg12[%c0_44, %c0_45], %48 {strides = array<i32>} : memref<72x256xf32, #tpu.memory_space<vmem>>, vector<4x256xf32>,
    %c16_i32 = arith.constant 16 : i32
    %50 = tpu.dynamic_rotate %44 by %c16_i32 dim 1 : vector<4x256xf32>, i32 -> vector<4x256xf32>
    %c1_46 = arith.constant 1 : index
    %c0_47 = arith.constant 0 : index
    %51 = vector.load %arg6[%c1_46, %c0_47] : memref<9x256xf32, #tpu.memory_space<vmem>>, vector<1x256xf32>
    %52 = vector.broadcast %51 : vector<1x256xf32> to vector<4x256xf32>
    %53 = arith.mulf %50, %52 : vector<4x256xf32>
    %c4 = arith.constant 4 : index
    %c0_48 = arith.constant 0 : index
    %54 = vector.load %arg12[%c4, %c0_48] : memref<72x256xf32, #tpu.memory_space<vmem>>, vector<4x256xf32>
    tpu.vector_store %arg12[%c4, %c0_48], %53 {strides = array<i32>} : memref<72x256xf32, #tpu.memory_space<vmem>>, vector<4x256xf32>,
    %c15_i32 = arith.constant 15 : i32
    %55 = tpu.dynamic_rotate %44 by %c15_i32 dim 1 : vector<4x256xf32>, i32 -> vector<4x256xf32>
    %c2_49 = arith.constant 2 : index
    %c0_50 = arith.constant 0 : index
    %56 = vector.load %arg6[%c2_49, %c0_50] : memref<9x256xf32, #tpu.memory_space<vmem>>, vector<1x256xf32>
    %57 = vector.broadcast %56 : vector<1x256xf32> to vector<4x256xf32>
    %58 = arith.mulf %55, %57 : vector<4x256xf32>
    %c8 = arith.constant 8 : index
    %c0_51 = arith.constant 0 : index
    %59 = vector.load %arg12[%c8, %c0_51] : memref<72x256xf32, #tpu.memory_space<vmem>>, vector<4x256xf32>
    tpu.vector_store %arg12[%c8, %c0_51], %58 {strides = array<i32>} : memref<72x256xf32, #tpu.memory_space<vmem>>, vector<4x256xf32>,
    %c1_i32 = arith.constant 1 : i32
    %60 = tpu.dynamic_rotate %44 by %c1_i32 dim 1 : vector<4x256xf32>, i32 -> vector<4x256xf32>
    %c3_52 = arith.constant 3 : index
    %c0_53 = arith.constant 0 : index
    %61 = vector.load %arg6[%c3_52, %c0_53] : memref<9x256xf32, #tpu.memory_space<vmem>>, vector<1x256xf32>
    %62 = vector.broadcast %61 : vector<1x256xf32> to vector<4x256xf32>
    %63 = arith.mulf %60, %62 : vector<4x256xf32>
    %c12 = arith.constant 12 : index
    %c0_54 = arith.constant 0 : index
    %64 = vector.load %arg12[%c12, %c0_54] : memref<72x256xf32, #tpu.memory_space<vmem>>, vector<4x256xf32>
    tpu.vector_store %arg12[%c12, %c0_54], %63 {strides = array<i32>} : memref<72x256xf32, #tpu.memory_space<vmem>>, vector<4x256xf32>,
    %c16 = arith.constant 16 : index
    %c0_55 = arith.constant 0 : index
    %65 = vector.load %arg12[%c16, %c0_55] : memref<72x256xf32, #tpu.memory_space<vmem>>, vector<4x256xf32>
    tpu.vector_store %arg12[%c16, %c0_55], %44 {strides = array<i32>} : memref<72x256xf32, #tpu.memory_space<vmem>>, vector<4x256xf32>,
    %c255_i32 = arith.constant 255 : i32
    %66 = tpu.dynamic_rotate %44 by %c255_i32 dim 1 : vector<4x256xf32>, i32 -> vector<4x256xf32>
    %c5 = arith.constant 5 : index
    %c0_56 = arith.constant 0 : index
    %67 = vector.load %arg6[%c5, %c0_56] : memref<9x256xf32, #tpu.memory_space<vmem>>, vector<1x256xf32>
    %68 = vector.broadcast %67 : vector<1x256xf32> to vector<4x256xf32>
    %69 = arith.mulf %66, %68 : vector<4x256xf32>
    %c20 = arith.constant 20 : index
    %c0_57 = arith.constant 0 : index
    %70 = vector.load %arg12[%c20, %c0_57] : memref<72x256xf32, #tpu.memory_space<vmem>>, vector<4x256xf32>
    tpu.vector_store %arg12[%c20, %c0_57], %69 {strides = array<i32>} : memref<72x256xf32, #tpu.memory_space<vmem>>, vector<4x256xf32>,
    %c241_i32 = arith.constant 241 : i32
    %71 = tpu.dynamic_rotate %44 by %c241_i32 dim 1 : vector<4x256xf32>, i32 -> vector<4x256xf32>
    %c6 = arith.constant 6 : index
    %c0_58 = arith.constant 0 : index
    %72 = vector.load %arg6[%c6, %c0_58] : memref<9x256xf32, #tpu.memory_space<vmem>>, vector<1x256xf32>
    %73 = vector.broadcast %72 : vector<1x256xf32> to vector<4x256xf32>
    %74 = arith.mulf %71, %73 : vector<4x256xf32>
    %c24 = arith.constant 24 : index
    %c0_59 = arith.constant 0 : index
    %75 = vector.load %arg12[%c24, %c0_59] : memref<72x256xf32, #tpu.memory_space<vmem>>, vector<4x256xf32>
    tpu.vector_store %arg12[%c24, %c0_59], %74 {strides = array<i32>} : memref<72x256xf32, #tpu.memory_space<vmem>>, vector<4x256xf32>,
    %c240_i32 = arith.constant 240 : i32
    %76 = tpu.dynamic_rotate %44 by %c240_i32 dim 1 : vector<4x256xf32>, i32 -> vector<4x256xf32>
    %c7 = arith.constant 7 : index
    %c0_60 = arith.constant 0 : index
    %77 = vector.load %arg6[%c7, %c0_60] : memref<9x256xf32, #tpu.memory_space<vmem>>, vector<1x256xf32>
    %78 = vector.broadcast %77 : vector<1x256xf32> to vector<4x256xf32>
    %79 = arith.mulf %76, %78 : vector<4x256xf32>
    %c28 = arith.constant 28 : index
    %c0_61 = arith.constant 0 : index
    %80 = vector.load %arg12[%c28, %c0_61] : memref<72x256xf32, #tpu.memory_space<vmem>>, vector<4x256xf32>
    tpu.vector_store %arg12[%c28, %c0_61], %79 {strides = array<i32>} : memref<72x256xf32, #tpu.memory_space<vmem>>, vector<4x256xf32>,
    %c239_i32 = arith.constant 239 : i32
    %81 = tpu.dynamic_rotate %44 by %c239_i32 dim 1 : vector<4x256xf32>, i32 -> vector<4x256xf32>
    %c8_62 = arith.constant 8 : index
    %c0_63 = arith.constant 0 : index
    %82 = vector.load %arg6[%c8_62, %c0_63] : memref<9x256xf32, #tpu.memory_space<vmem>>, vector<1x256xf32>
    %83 = vector.broadcast %82 : vector<1x256xf32> to vector<4x256xf32>
    %84 = arith.mulf %81, %83 : vector<4x256xf32>
    %c32 = arith.constant 32 : index
    %c0_64 = arith.constant 0 : index
    %85 = vector.load %arg12[%c32, %c0_64] : memref<72x256xf32, #tpu.memory_space<vmem>>, vector<4x256xf32>
    tpu.vector_store %arg12[%c32, %c0_64], %84 {strides = array<i32>} : memref<72x256xf32, #tpu.memory_space<vmem>>, vector<4x256xf32>,
    %c17_i32_65 = arith.constant 17 : i32
    %86 = tpu.dynamic_rotate %42 by %c17_i32_65 dim 1 : vector<4x256xf32>, i32 -> vector<4x256xf32>
    %c0_66 = arith.constant 0 : index
    %c0_67 = arith.constant 0 : index
    %87 = vector.load %arg6[%c0_66, %c0_67] : memref<9x256xf32, #tpu.memory_space<vmem>>, vector<1x256xf32>
    %88 = vector.broadcast %87 : vector<1x256xf32> to vector<4x256xf32>
    %89 = arith.mulf %86, %88 : vector<4x256xf32>
    %c36 = arith.constant 36 : index
    %c0_68 = arith.constant 0 : index
    %90 = vector.load %arg12[%c36, %c0_68] : memref<72x256xf32, #tpu.memory_space<vmem>>, vector<4x256xf32>
    tpu.vector_store %arg12[%c36, %c0_68], %89 {strides = array<i32>} : memref<72x256xf32, #tpu.memory_space<vmem>>, vector<4x256xf32>,
    %c16_i32_69 = arith.constant 16 : i32
    %91 = tpu.dynamic_rotate %42 by %c16_i32_69 dim 1 : vector<4x256xf32>, i32 -> vector<4x256xf32>
    %c1_70 = arith.constant 1 : index
    %c0_71 = arith.constant 0 : index
    %92 = vector.load %arg6[%c1_70, %c0_71] : memref<9x256xf32, #tpu.memory_space<vmem>>, vector<1x256xf32>
    %93 = vector.broadcast %92 : vector<1x256xf32> to vector<4x256xf32>
    %94 = arith.mulf %91, %93 : vector<4x256xf32>
    %c40 = arith.constant 40 : index
    %c0_72 = arith.constant 0 : index
    %95 = vector.load %arg12[%c40, %c0_72] : memref<72x256xf32, #tpu.memory_space<vmem>>, vector<4x256xf32>
    tpu.vector_store %arg12[%c40, %c0_72], %94 {strides = array<i32>} : memref<72x256xf32, #tpu.memory_space<vmem>>, vector<4x256xf32>,
    %c15_i32_73 = arith.constant 15 : i32
    %96 = tpu.dynamic_rotate %42 by %c15_i32_73 dim 1 : vector<4x256xf32>, i32 -> vector<4x256xf32>
    %c2_74 = arith.constant 2 : index
    %c0_75 = arith.constant 0 : index
    %97 = vector.load %arg6[%c2_74, %c0_75] : memref<9x256xf32, #tpu.memory_space<vmem>>, vector<1x256xf32>
    %98 = vector.broadcast %97 : vector<1x256xf32> to vector<4x256xf32>
    %99 = arith.mulf %96, %98 : vector<4x256xf32>
    %c44 = arith.constant 44 : index
    %c0_76 = arith.constant 0 : index
    %100 = vector.load %arg12[%c44, %c0_76] : memref<72x256xf32, #tpu.memory_space<vmem>>, vector<4x256xf32>
    tpu.vector_store %arg12[%c44, %c0_76], %99 {strides = array<i32>} : memref<72x256xf32, #tpu.memory_space<vmem>>, vector<4x256xf32>,
    %c1_i32_77 = arith.constant 1 : i32
    %101 = tpu.dynamic_rotate %42 by %c1_i32_77 dim 1 : vector<4x256xf32>, i32 -> vector<4x256xf32>
    %c3_78 = arith.constant 3 : index
    %c0_79 = arith.constant 0 : index
    %102 = vector.load %arg6[%c3_78, %c0_79] : memref<9x256xf32, #tpu.memory_space<vmem>>, vector<1x256xf32>
    %103 = vector.broadcast %102 : vector<1x256xf32> to vector<4x256xf32>
    %104 = arith.mulf %101, %103 : vector<4x256xf32>
    %c48 = arith.constant 48 : index
    %c0_80 = arith.constant 0 : index
    %105 = vector.load %arg12[%c48, %c0_80] : memref<72x256xf32, #tpu.memory_space<vmem>>, vector<4x256xf32>
    tpu.vector_store %arg12[%c48, %c0_80], %104 {strides = array<i32>} : memref<72x256xf32, #tpu.memory_space<vmem>>, vector<4x256xf32>,
    %c52 = arith.constant 52 : index
    %c0_81 = arith.constant 0 : index
    %106 = vector.load %arg12[%c52, %c0_81] : memref<72x256xf32, #tpu.memory_space<vmem>>, vector<4x256xf32>
    tpu.vector_store %arg12[%c52, %c0_81], %42 {strides = array<i32>} : memref<72x256xf32, #tpu.memory_space<vmem>>, vector<4x256xf32>,
    %c255_i32_82 = arith.constant 255 : i32
    %107 = tpu.dynamic_rotate %42 by %c255_i32_82 dim 1 : vector<4x256xf32>, i32 -> vector<4x256xf32>
    %c5_83 = arith.constant 5 : index
    %c0_84 = arith.constant 0 : index
    %108 = vector.load %arg6[%c5_83, %c0_84] : memref<9x256xf32, #tpu.memory_space<vmem>>, vector<1x256xf32>
    %109 = vector.broadcast %108 : vector<1x256xf32> to vector<4x256xf32>
    %110 = arith.mulf %107, %109 : vector<4x256xf32>
    %c56 = arith.constant 56 : index
    %c0_85 = arith.constant 0 : index
    %111 = vector.load %arg12[%c56, %c0_85] : memref<72x256xf32, #tpu.memory_space<vmem>>, vector<4x256xf32>
    tpu.vector_store %arg12[%c56, %c0_85], %110 {strides = array<i32>} : memref<72x256xf32, #tpu.memory_space<vmem>>, vector<4x256xf32>,
    %c241_i32_86 = arith.constant 241 : i32
    %112 = tpu.dynamic_rotate %42 by %c241_i32_86 dim 1 : vector<4x256xf32>, i32 -> vector<4x256xf32>
    %c6_87 = arith.constant 6 : index
    %c0_88 = arith.constant 0 : index
    %113 = vector.load %arg6[%c6_87, %c0_88] : memref<9x256xf32, #tpu.memory_space<vmem>>, vector<1x256xf32>
    %114 = vector.broadcast %113 : vector<1x256xf32> to vector<4x256xf32>
    %115 = arith.mulf %112, %114 : vector<4x256xf32>
    %c60 = arith.constant 60 : index
    %c0_89 = arith.constant 0 : index
    %116 = vector.load %arg12[%c60, %c0_89] : memref<72x256xf32, #tpu.memory_space<vmem>>, vector<4x256xf32>
    tpu.vector_store %arg12[%c60, %c0_89], %115 {strides = array<i32>} : memref<72x256xf32, #tpu.memory_space<vmem>>, vector<4x256xf32>,
    %c240_i32_90 = arith.constant 240 : i32
    %117 = tpu.dynamic_rotate %42 by %c240_i32_90 dim 1 : vector<4x256xf32>, i32 -> vector<4x256xf32>
    %c7_91 = arith.constant 7 : index
    %c0_92 = arith.constant 0 : index
    %118 = vector.load %arg6[%c7_91, %c0_92] : memref<9x256xf32, #tpu.memory_space<vmem>>, vector<1x256xf32>
    %119 = vector.broadcast %118 : vector<1x256xf32> to vector<4x256xf32>
    %120 = arith.mulf %117, %119 : vector<4x256xf32>
    %c64 = arith.constant 64 : index
    %c0_93 = arith.constant 0 : index
    %121 = vector.load %arg12[%c64, %c0_93] : memref<72x256xf32, #tpu.memory_space<vmem>>, vector<4x256xf32>
    tpu.vector_store %arg12[%c64, %c0_93], %120 {strides = array<i32>} : memref<72x256xf32, #tpu.memory_space<vmem>>, vector<4x256xf32>,
    %c239_i32_94 = arith.constant 239 : i32
    %122 = tpu.dynamic_rotate %42 by %c239_i32_94 dim 1 : vector<4x256xf32>, i32 -> vector<4x256xf32>
    %c8_95 = arith.constant 8 : index
    %c0_96 = arith.constant 0 : index
    %123 = vector.load %arg6[%c8_95, %c0_96] : memref<9x256xf32, #tpu.memory_space<vmem>>, vector<1x256xf32>
    %124 = vector.broadcast %123 : vector<1x256xf32> to vector<4x256xf32>
    %125 = arith.mulf %122, %124 : vector<4x256xf32>
    %c68 = arith.constant 68 : index
    %c0_97 = arith.constant 0 : index
    %126 = vector.load %arg12[%c68, %c0_97] : memref<72x256xf32, #tpu.memory_space<vmem>>, vector<4x256xf32>
    tpu.vector_store %arg12[%c68, %c0_97], %125 {strides = array<i32>} : memref<72x256xf32, #tpu.memory_space<vmem>>, vector<4x256xf32>,
    %c0_98 = arith.constant 0 : index
    %c0_99 = arith.constant 0 : index
    %127 = vector.load %arg7[%c0_98, %c0_99] : memref<4x72xbf16, #tpu.memory_space<vmem>>, vector<4x72xbf16>
    %c0_100 = arith.constant 0 : index
    %c0_101 = arith.constant 0 : index
    %128 = vector.load %arg12[%c0_100, %c0_101] : memref<72x256xf32, #tpu.memory_space<vmem>>, vector<72x256xf32>
    %129 = arith.truncf %128 : vector<72x256xf32> to vector<72x256xbf16>
    %cst_102 = arith.constant dense<0.000000e+00> : vector<4x256xf32>
    %130 = tpu.matmul %127, %129, %cst_102 {dimension_numbers = #tpu.dot_dimension_numbers<[1], [0], [0], [1], [0, 0, 1, 1], [], []>} : vector<4x72xbf16>, vector<72x256xbf16>, vector<4x256xf32> -> vector<4x256xf32>
    %c0_103 = arith.constant 0 : index
    %c0_104 = arith.constant 0 : index
    %131 = vector.load %arg8[%c0_103, %c0_104] : memref<4x1xf32, #tpu.memory_space<vmem>>, vector<4x1xf32>
    %132 = vector.broadcast %131 : vector<4x1xf32> to vector<4x256xf32>
    %133 = arith.addf %130, %132 : vector<4x256xf32>
    %cst_105 = arith.constant 0.000000e+00 : f32
    %134 = vector.broadcast %cst_105 : f32 to vector<4x256xf32>
    %135 = arith.maximumf %133, %134 : vector<4x256xf32>
    %c17_i32_106 = arith.constant 17 : i32
    %136 = tpu.dynamic_rotate %135 by %c17_i32_106 dim 1 : vector<4x256xf32>, i32 -> vector<4x256xf32>
    %c0_107 = arith.constant 0 : index
    %c0_108 = arith.constant 0 : index
    %137 = vector.load %arg6[%c0_107, %c0_108] : memref<9x256xf32, #tpu.memory_space<vmem>>, vector<1x256xf32>
    %138 = vector.broadcast %137 : vector<1x256xf32> to vector<4x256xf32>
    %139 = arith.mulf %136, %138 : vector<4x256xf32>
    %c0_109 = arith.constant 0 : index
    %c0_110 = arith.constant 0 : index
    %140 = vector.load %arg13[%c0_109, %c0_110] : memref<36x256xf32, #tpu.memory_space<vmem>>, vector<4x256xf32>
    tpu.vector_store %arg13[%c0_109, %c0_110], %139 {strides = array<i32>} : memref<36x256xf32, #tpu.memory_space<vmem>>, vector<4x256xf32>,
    %c16_i32_111 = arith.constant 16 : i32
    %141 = tpu.dynamic_rotate %135 by %c16_i32_111 dim 1 : vector<4x256xf32>, i32 -> vector<4x256xf32>
    %c1_112 = arith.constant 1 : index
    %c0_113 = arith.constant 0 : index
    %142 = vector.load %arg6[%c1_112, %c0_113] : memref<9x256xf32, #tpu.memory_space<vmem>>, vector<1x256xf32>
    %143 = vector.broadcast %142 : vector<1x256xf32> to vector<4x256xf32>
    %144 = arith.mulf %141, %143 : vector<4x256xf32>
    %c4_114 = arith.constant 4 : index
    %c0_115 = arith.constant 0 : index
    %145 = vector.load %arg13[%c4_114, %c0_115] : memref<36x256xf32, #tpu.memory_space<vmem>>, vector<4x256xf32>
    tpu.vector_store %arg13[%c4_114, %c0_115], %144 {strides = array<i32>} : memref<36x256xf32, #tpu.memory_space<vmem>>, vector<4x256xf32>,
    %c15_i32_116 = arith.constant 15 : i32
    %146 = tpu.dynamic_rotate %135 by %c15_i32_116 dim 1 : vector<4x256xf32>, i32 -> vector<4x256xf32>
    %c2_117 = arith.constant 2 : index
    %c0_118 = arith.constant 0 : index
    %147 = vector.load %arg6[%c2_117, %c0_118] : memref<9x256xf32, #tpu.memory_space<vmem>>, vector<1x256xf32>
    %148 = vector.broadcast %147 : vector<1x256xf32> to vector<4x256xf32>
    %149 = arith.mulf %146, %148 : vector<4x256xf32>
    %c8_119 = arith.constant 8 : index
    %c0_120 = arith.constant 0 : index
    %150 = vector.load %arg13[%c8_119, %c0_120] : memref<36x256xf32, #tpu.memory_space<vmem>>, vector<4x256xf32>
    tpu.vector_store %arg13[%c8_119, %c0_120], %149 {strides = array<i32>} : memref<36x256xf32, #tpu.memory_space<vmem>>, vector<4x256xf32>,
    %c1_i32_121 = arith.constant 1 : i32
    %151 = tpu.dynamic_rotate %135 by %c1_i32_121 dim 1 : vector<4x256xf32>, i32 -> vector<4x256xf32>
    %c3_122 = arith.constant 3 : index
    %c0_123 = arith.constant 0 : index
    %152 = vector.load %arg6[%c3_122, %c0_123] : memref<9x256xf32, #tpu.memory_space<vmem>>, vector<1x256xf32>
    %153 = vector.broadcast %152 : vector<1x256xf32> to vector<4x256xf32>
    %154 = arith.mulf %151, %153 : vector<4x256xf32>
    %c12_124 = arith.constant 12 : index
    %c0_125 = arith.constant 0 : index
    %155 = vector.load %arg13[%c12_124, %c0_125] : memref<36x256xf32, #tpu.memory_space<vmem>>, vector<4x256xf32>
    tpu.vector_store %arg13[%c12_124, %c0_125], %154 {strides = array<i32>} : memref<36x256xf32, #tpu.memory_space<vmem>>, vector<4x256xf32>,
    %c16_126 = arith.constant 16 : index
    %c0_127 = arith.constant 0 : index
    %156 = vector.load %arg13[%c16_126, %c0_127] : memref<36x256xf32, #tpu.memory_space<vmem>>, vector<4x256xf32>
    tpu.vector_store %arg13[%c16_126, %c0_127], %135 {strides = array<i32>} : memref<36x256xf32, #tpu.memory_space<vmem>>, vector<4x256xf32>,
    %c255_i32_128 = arith.constant 255 : i32
    %157 = tpu.dynamic_rotate %135 by %c255_i32_128 dim 1 : vector<4x256xf32>, i32 -> vector<4x256xf32>
    %c5_129 = arith.constant 5 : index
    %c0_130 = arith.constant 0 : index
    %158 = vector.load %arg6[%c5_129, %c0_130] : memref<9x256xf32, #tpu.memory_space<vmem>>, vector<1x256xf32>
    %159 = vector.broadcast %158 : vector<1x256xf32> to vector<4x256xf32>
    %160 = arith.mulf %157, %159 : vector<4x256xf32>
    %c20_131 = arith.constant 20 : index
    %c0_132 = arith.constant 0 : index
    %161 = vector.load %arg13[%c20_131, %c0_132] : memref<36x256xf32, #tpu.memory_space<vmem>>, vector<4x256xf32>
    tpu.vector_store %arg13[%c20_131, %c0_132], %160 {strides = array<i32>} : memref<36x256xf32, #tpu.memory_space<vmem>>, vector<4x256xf32>,
    %c241_i32_133 = arith.constant 241 : i32
    %162 = tpu.dynamic_rotate %135 by %c241_i32_133 dim 1 : vector<4x256xf32>, i32 -> vector<4x256xf32>
    %c6_134 = arith.constant 6 : index
    %c0_135 = arith.constant 0 : index
    %163 = vector.load %arg6[%c6_134, %c0_135] : memref<9x256xf32, #tpu.memory_space<vmem>>, vector<1x256xf32>
    %164 = vector.broadcast %163 : vector<1x256xf32> to vector<4x256xf32>
    %165 = arith.mulf %162, %164 : vector<4x256xf32>
    %c24_136 = arith.constant 24 : index
    %c0_137 = arith.constant 0 : index
    %166 = vector.load %arg13[%c24_136, %c0_137] : memref<36x256xf32, #tpu.memory_space<vmem>>, vector<4x256xf32>
    tpu.vector_store %arg13[%c24_136, %c0_137], %165 {strides = array<i32>} : memref<36x256xf32, #tpu.memory_space<vmem>>, vector<4x256xf32>,
    %c240_i32_138 = arith.constant 240 : i32
    %167 = tpu.dynamic_rotate %135 by %c240_i32_138 dim 1 : vector<4x256xf32>, i32 -> vector<4x256xf32>
    %c7_139 = arith.constant 7 : index
    %c0_140 = arith.constant 0 : index
    %168 = vector.load %arg6[%c7_139, %c0_140] : memref<9x256xf32, #tpu.memory_space<vmem>>, vector<1x256xf32>
    %169 = vector.broadcast %168 : vector<1x256xf32> to vector<4x256xf32>
    %170 = arith.mulf %167, %169 : vector<4x256xf32>
    %c28_141 = arith.constant 28 : index
    %c0_142 = arith.constant 0 : index
    %171 = vector.load %arg13[%c28_141, %c0_142] : memref<36x256xf32, #tpu.memory_space<vmem>>, vector<4x256xf32>
    tpu.vector_store %arg13[%c28_141, %c0_142], %170 {strides = array<i32>} : memref<36x256xf32, #tpu.memory_space<vmem>>, vector<4x256xf32>,
    %c239_i32_143 = arith.constant 239 : i32
    %172 = tpu.dynamic_rotate %135 by %c239_i32_143 dim 1 : vector<4x256xf32>, i32 -> vector<4x256xf32>
    %c8_144 = arith.constant 8 : index
    %c0_145 = arith.constant 0 : index
    %173 = vector.load %arg6[%c8_144, %c0_145] : memref<9x256xf32, #tpu.memory_space<vmem>>, vector<1x256xf32>
    %174 = vector.broadcast %173 : vector<1x256xf32> to vector<4x256xf32>
    %175 = arith.mulf %172, %174 : vector<4x256xf32>
    %c32_146 = arith.constant 32 : index
    %c0_147 = arith.constant 0 : index
    %176 = vector.load %arg13[%c32_146, %c0_147] : memref<36x256xf32, #tpu.memory_space<vmem>>, vector<4x256xf32>
    tpu.vector_store %arg13[%c32_146, %c0_147], %175 {strides = array<i32>} : memref<36x256xf32, #tpu.memory_space<vmem>>, vector<4x256xf32>,
    %c0_148 = arith.constant 0 : index
    %c0_149 = arith.constant 0 : index
    %177 = vector.load %arg9[%c0_148, %c0_149] : memref<4x36xbf16, #tpu.memory_space<vmem>>, vector<4x36xbf16>
    %c0_150 = arith.constant 0 : index
    %c0_151 = arith.constant 0 : index
    %178 = vector.load %arg13[%c0_150, %c0_151] : memref<36x256xf32, #tpu.memory_space<vmem>>, vector<36x256xf32>
    %179 = arith.truncf %178 : vector<36x256xf32> to vector<36x256xbf16>
    %cst_152 = arith.constant dense<0.000000e+00> : vector<4x256xf32>
    %180 = tpu.matmul %177, %179, %cst_152 {dimension_numbers = #tpu.dot_dimension_numbers<[1], [0], [0], [1], [0, 0, 1, 1], [], []>} : vector<4x36xbf16>, vector<36x256xbf16>, vector<4x256xf32> -> vector<4x256xf32>
    %c0_153 = arith.constant 0 : index
    %c0_154 = arith.constant 0 : index
    %181 = vector.load %arg10[%c0_153, %c0_154] : memref<4x1xf32, #tpu.memory_space<vmem>>, vector<4x1xf32>
    %182 = vector.broadcast %181 : vector<4x1xf32> to vector<4x256xf32>
    %183 = arith.addf %180, %182 : vector<4x256xf32>
    %cst_155 = arith.constant 0.000000e+00 : f32
    %184 = vector.broadcast %cst_155 : f32 to vector<4x256xf32>
    %185 = arith.maximumf %183, %184 : vector<4x256xf32>
    %c0_156 = arith.constant 0 : index
    %c0_157 = arith.constant 0 : index
    %c0_158 = arith.constant 0 : index
    %186 = vector.load %arg11[%c0_156, %c0_157, %c0_158] : memref<1x4x256xf32, #tpu.memory_space<vmem>>, vector<1x4x256xf32>
    %187 = vector.shape_cast %186 : vector<1x4x256xf32> to vector<4x256xf32>
    %188 = vector.shape_cast %185 : vector<4x256xf32> to vector<1x4x256xf32>
    tpu.vector_store %arg11[%c0_156, %c0_157, %c0_158], %188 {strides = array<i32>} : memref<1x4x256xf32, #tpu.memory_space<vmem>>, vector<1x4x256xf32>,
    return
  }
  func.func @transform_0(%arg0: i32) -> (i32, i32, i32) {
    %c0_i32 = arith.constant 0 : i32
    %c0_i32_0 = arith.constant 0 : i32
    %c0_i32_1 = arith.constant 0 : i32
    return %arg0, %c0_i32, %c0_i32_0 : i32, i32, i32
  }
  func.func @transform_1(%arg0: i32) -> (i32, i32, i32) {
    %c0_i32 = arith.constant 0 : i32
    %c0_i32_0 = arith.constant 0 : i32
    %c0_i32_1 = arith.constant 0 : i32
    return %arg0, %c0_i32, %c0_i32_0 : i32, i32, i32
  }
  func.func @transform_2(%arg0: i32) -> (i32, i32, i32) {
    %c0_i32 = arith.constant 0 : i32
    %c0_i32_0 = arith.constant 0 : i32
    %c0_i32_1 = arith.constant 0 : i32
    %c0_i32_2 = arith.constant 0 : i32
    return %c0_i32, %c0_i32_0, %c0_i32_1 : i32, i32, i32
  }
  func.func @transform_3(%arg0: i32) -> (i32, i32) {
    %c0_i32 = arith.constant 0 : i32
    %c0_i32_0 = arith.constant 0 : i32
    %c0_i32_1 = arith.constant 0 : i32
    return %c0_i32, %c0_i32_0 : i32, i32
  }
  func.func @transform_4(%arg0: i32) -> (i32, i32, i32) {
    %c0_i32 = arith.constant 0 : i32
    %c0_i32_0 = arith.constant 0 : i32
    %c0_i32_1 = arith.constant 0 : i32
    %c0_i32_2 = arith.constant 0 : i32
    return %c0_i32, %c0_i32_0, %c0_i32_1 : i32, i32, i32
  }
  func.func @transform_5(%arg0: i32) -> (i32, i32) {
    %c0_i32 = arith.constant 0 : i32
    %c0_i32_0 = arith.constant 0 : i32
    %c0_i32_1 = arith.constant 0 : i32
    return %c0_i32, %c0_i32_0 : i32, i32
  }
  func.func @transform_6(%arg0: i32) -> (i32, i32) {
    %c0_i32 = arith.constant 0 : i32
    %c0_i32_0 = arith.constant 0 : i32
    %c0_i32_1 = arith.constant 0 : i32
    return %c0_i32, %c0_i32_0 : i32, i32
  }
  func.func @transform_7(%arg0: i32) -> (i32, i32) {
    %c0_i32 = arith.constant 0 : i32
    %c0_i32_0 = arith.constant 0 : i32
    %c0_i32_1 = arith.constant 0 : i32
    return %c0_i32, %c0_i32_0 : i32, i32
  }
  func.func @transform_8(%arg0: i32) -> (i32, i32) {
    %c0_i32 = arith.constant 0 : i32
    %c0_i32_0 = arith.constant 0 : i32
    %c0_i32_1 = arith.constant 0 : i32
    return %c0_i32, %c0_i32_0 : i32, i32
  }
  func.func @transform_9(%arg0: i32) -> (i32, i32) {
    %c0_i32 = arith.constant 0 : i32
    %c0_i32_0 = arith.constant 0 : i32
    %c0_i32_1 = arith.constant 0 : i32
    return %c0_i32, %c0_i32_0 : i32, i32
  }
  func.func @transform_10(%arg0: i32) -> (i32, i32, i32) {
    %c0_i32 = arith.constant 0 : i32
    %c0_i32_0 = arith.constant 0 : i32
    %c0_i32_1 = arith.constant 0 : i32
    return %arg0, %c0_i32, %c0_i32_0 : i32, i32, i32
  }
}

</mosaic_0001>

<bundles_post_ra>
// kernel: upresnet_forward.1
= control target key start
LH: loop header
LB: loop body
LE: loop exit
PB: predicated region body
PF: predicated region fallthrough
CT: control target
= control target key end

     0   :  { %s2223_s13 = smov 0   ;;  %s2824_s0 = inlined_call_operand.vmem [shape: f32[2,4,64], index: 0, kind: input, shape index: {}]   ;;  %s2825_s1 = inlined_call_operand.vmem [shape: f32[2,4,256], index: 1, kind: input, shape index: {}]   ;;  %s2826_s2 = inlined_call_operand.vmem [shape: f32[4,4,4], index: 2, kind: input, shape index: {}]   ;;  %s2827_s3 = inlined_call_operand.vmem [shape: f32[4,1], index: 3, kind: input, shape index: {}]   ;;  %s2828_s4 = inlined_call_operand.vmem [shape: f32[4,64,256], index: 4, kind: input, shape index: {}]   ;;  %s2829_s5 = inlined_call_operand.vmem [shape: f32[9,256], index: 5, kind: input, shape index: {}]   ;;  %s2830_s6 = inlined_call_operand.vmem [shape: bf16[4,72], index: 6, kind: input, shape index: {}]   ;;  %s2831_s7 = inlined_call_operand.vmem [shape: f32[4,1], index: 7, kind: input, shape index: {}]   ;;  %s2832_s8 = inlined_call_operand.vmem [shape: bf16[4,36], index: 8, kind: input, shape index: {}]   ;;  %s2833_s9 = inlined_call_operand.vmem [shape: f32[4,1], index: 9, kind: input, shape index: {}]   ;;  %s2834_s10 = inlined_call_operand.vmem [shape: f32[2,4,256], index: 10, kind: output, shape index: {}]  }
   0x1 LB: > { %s1927_s14 = sadd.s32 4294967295, %s2155_s13   ;;  %p1931_p0 = scmp.ge.s32.totalorder %s2155_s13, 1  ;;  %s2155_s13 = sphi %s2223_s13, %s20_s13  }
   0x2   : > { %p321_p1 = scmp.lt.s32.totalorder %s2155_s13, 3 }
   0x4   : > { %p322_p2 = pnand %p1931_p0, %p321_p1 }
   0x5   : > { %p363_p3 = scmp.lt.s32.totalorder (!%p322_p2), %s1927_s14, 1  ;;  %v2157_v0 = vmov (!%p322_p2), 0.0   ;;  %v380_v1 = vld [vmem:[%s2827_s3] sm:$0xf] (!%p322_p2)  ;;  %vm2158_vm0 = vmmov (!%p322_p2), 0   ;;  %v465_v2 = vld [vmem:[%s2828_s4 + $0x8] sm:$0xff] (!%p322_p2) }
   0x6   : > { %325 = sbr.rel (%p322_p2) target bundleno = 1438 (0x59e), region = 60  ;;  %2037 = vmatprep.subr.mxu0 (!%p322_p2), %v2157_v0  ;;  %2042 = vmatprep.subr.mxu1 (!%p322_p2), %v2157_v0  ;;  %v467_v3 = vld [vmem:[%s2828_s4 + $0x18] sm:$0xff] (!%p322_p2)  ;;  %v1943_v4 = vld [vmem:[%s2828_s4 + $0x88] sm:$0xff] (!%p322_p2)  ;;  %v379_v5 = vld [vmem:[%s2826_s2] sm:$0xf] (!%p322_p2)  ;;  %v2159_v7 = vmov (!%p322_p2), 0  }
   0x7   : > { %2039 = vmatprep.mubr.msk.f32.mxu0 (!%p322_p2), %vm2158_vm0, %v2157_v0  ;;  %2044 = vmatprep.mubr.msk.f32.mxu1 (!%p322_p2), %vm2158_vm0, %v2157_v0  ;;  %v1939_v6 = vld [vmem:[%s2826_s2 + $0x4] sm:$0xf] (!%p322_p2)  ;;  %v1945_v8 = vld [vmem:[%s2828_s4 + $0x98] sm:$0xff] (!%p322_p2)  ;;  %v466_v10 = vld [vmem:[%s2828_s4 + $0x10] sm:$0xff] (!%p322_p2)  ;;  %vm390_vm1 = vcmask (!%p322_p2), 1043456   ;;  %vm386_vm2 = vcmask (!%p322_p2), 31744   ;;  %v2073_v14 = vpack.c.bf16 (!%p322_p2), %v467_v3, %v465_v2 }
   0x8   : > { %2146 = vset.pattern.permute.xlu0 (!%p322_p2), %v2159_v7  ;;  %v464_v9 = vld [vmem:[%s2828_s4] sm:$0xff] (!%p322_p2)  ;;  %2147 = vset.pattern.permute.xlu1 (!%p322_p2), %v2159_v7  ;;  %v1944_v12 = vld [vmem:[%s2828_s4 + $0x90] sm:$0xff] (!%p322_p2)  ;;  %v469_v13 = vld [vmem:[%s2828_s4 + $0x28] sm:$0xff] (!%p322_p2)  ;;  %v2057_v15 = vpack.c.bf16 (!%p322_p2), %v1945_v8, %v1943_v4  ;;  %vm572_vm3 = vcmask (!%p322_p2), 523264   ;;  %s2160_s30 = smov (!%p322_p2), 1   ;;  %s2161_s11 = smov (!%p322_p2), 16  }
   0x9   : > { %383 = vperm.xlu0 (!%p322_p2), %2146, %v380_v1   ;;  %v1942_v11 = vld [vmem:[%s2828_s4 + $0x80] sm:$0xff] (!%p322_p2)  ;;  %v471_v16 = vld [vmem:[%s2828_s4 + $0x38] sm:$0xff] (!%p322_p2)  ;;  %v1947_v17 = vld [vmem:[%s2828_s4 + $0xa8] sm:$0xff] (!%p322_p2)  ;;  %v2075_v21 = vpack.c.bf16 (!%p322_p2), %v466_v10, %v464_v9  ;;  %s2162_s12 = smov (!%p322_p2), 17   ;;  %s2163_s17 = smov (!%p322_p2), 15   ;;  %vm1523_vm12 = vcmask (!%p322_p2), 588800  }
   0xa   : > { %v1949_v18 = vld [vmem:[%s2828_s4 + $0xb8] sm:$0xff] (!%p322_p2)  ;;  %v2059_v22 = vpack.c.bf16 (!%p322_p2), %v1944_v12, %v1942_v11  ;;  %v468_v23 = vld [vmem:[%s2828_s4 + $0x20] sm:$0xff] (!%p322_p2)  ;;  %v2077_v25 = vpack.c.bf16 (!%p322_p2), %v471_v16, %v469_v13  ;;  %v470_v27 = vld [vmem:[%s2828_s4 + $0x30] sm:$0xff] (!%p322_p2)  ;;  %s2164_s18 = smov (!%p322_p2), 127   ;;  %s2166_s19 = smov (!%p322_p2), 113   ;;  %vm1805_vm13 = vcmask (!%p322_p2), 1041408  }
   0xb   : > { %v2061_v26 = vpack.c.bf16 (!%p322_p2), %v1949_v18, %v1947_v17  ;;  %v1946_v28 = vld [vmem:[%s2828_s4 + $0xa0] sm:$0xff] (!%p322_p2)  ;;  %v1948_v29 = vld [vmem:[%s2828_s4 + $0xb0] sm:$0xff] (!%p322_p2)  ;;  %v473_v30 = vld [vmem:[%s2828_s4 + $0x48] sm:$0xff] (!%p322_p2)  ;;  %v2079_v34 = vpack.c.bf16 (!%p322_p2), %v470_v27, %v468_v23  ;;  %s2167_s20 = smov (!%p322_p2), 111   ;;  %vm1801_vm14 = vcmask (!%p322_p2), 293888  }
   0xc   : > { %v475_v31 = vld [vmem:[%s2828_s4 + $0x58] sm:$0xff] (!%p322_p2)  ;;  %v1951_v32 = vld [vmem:[%s2828_s4 + $0xc8] sm:$0xff] (!%p322_p2)  ;;  %v2063_v35 = vpack.c.bf16 (!%p322_p2), %v1948_v29, %v1946_v28  ;;  %v472_v36 = vld [vmem:[%s2828_s4 + $0x40] sm:$0xff] (!%p322_p2) }
   0xd   : > { %s2838_s14 = smov (!%p363_p3, %s1927_s14), 1  ;;  %v1953_v33 = vld [vmem:[%s2828_s4 + $0xd8] sm:$0xff]  ;;  %v474_v37 = vld [vmem:[%s2828_s4 + $0x50] sm:$0xff]  ;;  %v2081_v38 = vpack.c.bf16 %v475_v31, %v473_v30  ;;  %v1950_v40 = vld [vmem:[%s2828_s4 + $0xc0] sm:$0xff] }
   0xe   : > { %s1932_s15 = sshll.u32 %s2838_s14, 2  ;;  %s2835_s16 = sshll.u32 %s2838_s14, 3  ;;  %v2065_v39 = vpack.c.bf16 %v1953_v33, %v1951_v32  ;;  %v1952_v41 = vld [vmem:[%s2828_s4 + $0xd0] sm:$0xff]  ;;  %v477_v42 = vld [vmem:[%s2828_s4 + $0x68] sm:$0xff]  ;;  %v479_v43 = vld [vmem:[%s2828_s4 + $0x78] sm:$0xff]  ;;  %v2083_v46 = vpack.c.bf16 %v474_v37, %v472_v36 }
   0xf   : > { %s366_s25 = scalar_lea.vmem %s2824_s0, %s1932_s15  ;;  %s371_s28 = scalar_lea.vmem %s2825_s1, %s2835_s16  ;;  %v1955_v44 = vld [vmem:[%s2828_s4 + $0xe8] sm:$0xff]  ;;  %v1957_v45 = vld [vmem:[%s2828_s4 + $0xf8] sm:$0xff]  ;;  %v2067_v47 = vpack.c.bf16 %v1952_v41, %v1950_v40  ;;  %v2085_v48 = vpack.c.bf16 %v479_v43, %v477_v42  ;;  %v476_v50 = vld [vmem:[%s2828_s4 + $0x60] sm:$0xff] }
  0x10   : > { %v2296_v19 = vld [vmem:[%s366_s25] sm:$0xf]  ;;  %v2069_v49 = vpack.c.bf16 %v1957_v45, %v1955_v44  ;;  %v478_v51 = vld [vmem:[%s2828_s4 + $0x70] sm:$0xff]  ;;  %v1964_v57 = vld [vmem:[%s2828_s4 + $0x108] sm:$0xff]  ;;  %s2165_s15 = smov 112  }
  0x11   : > { %v2298_v20 = vld [vmem:[%s371_s28] sm:$0xff]  ;;  %2038 = vmatpush3.msk.msra.mxu0 %vm390_vm1, %v2296_v19  ;;  %2043 = vmatpush3.msk.msra.mxu1 %vm390_vm1, %v2296_v19  ;;  %v2087_v52 = vpack.c.bf16 %v478_v51, %v476_v50  ;;  %v1956_v54 = vld [vmem:[%s2828_s4 + $0xf0] sm:$0xff]  ;;  %v1966_v58 = vld [vmem:[%s2828_s4 + $0x118] sm:$0xff] }
  0x12   : > { %v2307_v24 = vcombine.high %v2298_v20, %v2298_v20  ;;  %1170 = vst [vmem:[#allocation2 + $0x20] sm:$0xf] %v2298_v20  ;;  %2040 = vmatmul.mubr.msk.f32.vlgmr.msra.gmra.mrb[0].mxu0 %vm386_vm2, %v379_v5  ;;  %2045 = vmatmul.mubr.msk.f32.vlgmr.msra.gmra.mrb[0].mxu1 %vm386_vm2, %v1939_v6  ;;  %v1954_v53 = vld [vmem:[%s2828_s4 + $0xe0] sm:$0xff]  ;;  %v1965_v3 = vld [vmem:[%s2828_s4 + $0x110] sm:$0xff]  ;;  %v2089_v4 = vpack.c.bf16 %v1966_v58, %v1964_v57  ;;  %v1968_v5 = vld [vmem:[%s2828_s4 + $0x128] sm:$0xff] }
  0x13   : > { %2074 = vmatprep.subr.bf16.mxu0 %v2073_v14  ;;  %2058 = vmatprep.subr.bf16.mxu1 %v2057_v15  ;;  %v2071_v55 = vpack.c.bf16 %v1956_v54, %v1954_v53  ;;  %v1963_v2 = vld [vmem:[%s2828_s4 + $0x100] sm:$0xff]  ;;  %v1970_v6 = vld [vmem:[%s2828_s4 + $0x138] sm:$0xff]  ;;  %v1960_v8 = vld [vmem:[%s2826_s2 + $0x8] sm:$0xf] }
  0x14   : > { %1171 = vst [vmem:[#allocation2 + $0x28] sm:$0xf] %v2307_v24  ;;  %2076 = vmatpush1.bf16.msra.mxu0 %v2075_v21  ;;  %2060 = vmatpush1.bf16.msra.mxu1 %v2059_v22  ;;  %v1980_v9 = vld [vmem:[%s2826_s2 + $0xc] sm:$0xf]  ;;  %v2091_v10 = vpack.c.bf16 %v1965_v3, %v1963_v2  ;;  %v2093_v11 = vpack.c.bf16 %v1970_v6, %v1968_v5  ;;  %v1967_v12 = vld [vmem:[%s2828_s4 + $0x120] sm:$0xff]  ;;  %v1969_v13 = vld [vmem:[%s2828_s4 + $0x130] sm:$0xff] }
  0x15   : > { %2078 = vmatprep.subr.bf16.mxu0 %v2077_v25  ;;  %2062 = vmatprep.subr.bf16.mxu1 %v2061_v26  ;;  %v1972_v14 = vld [vmem:[%s2828_s4 + $0x148] sm:$0xff]  ;;  %v1974_v15 = vld [vmem:[%s2828_s4 + $0x158] sm:$0xff]  ;;  %v2095_v16 = vpack.c.bf16 %v1969_v13, %v1967_v12  ;;  %v1971_v18 = vld [vmem:[%s2828_s4 + $0x140] sm:$0xff] }
  0x16   : > { %640 = vmatprep.mubr.f32.mxu1 %v2157_v0  ;;  %714 = vmatprep.mubr.f32.mxu0 %v2157_v0  ;;  %v2097_v17 = vpack.c.bf16 %v1974_v15, %v1972_v14  ;;  %v1976_v22 = vld [vmem:[%s2828_s4 + $0x168] sm:$0xff]  ;;  %v1978_v23 = vld [vmem:[%s2828_s4 + $0x178] sm:$0xff]  ;;  %v1975_v26 = vld [vmem:[%s2828_s4 + $0x160] sm:$0xff] }
  0x17   : > { %v2101_v25 = vpack.c.bf16 %v1978_v23, %v1976_v22  ;;  %v1977_v27 = vld [vmem:[%s2828_s4 + $0x170] sm:$0xff]  ;;  %v1984_v29 = vld [vmem:[%s2828_s4 + $0x188] sm:$0xff]  ;;  %v1986_v30 = vld [vmem:[%s2828_s4 + $0x198] sm:$0xff]  ;;  %1140 = vrot.lane.b32.xlu1 %v2298_v20, %s2160_s30 }
  0x18   : > { %2080 = vmatpush1.bf16.msra.mxu0 %v2079_v34  ;;  %2064 = vmatpush1.bf16.msra.mxu1 %v2063_v35  ;;  %v2103_v28 = vpack.c.bf16 %v1977_v27, %v1975_v26  ;;  %v2105_v31 = vpack.c.bf16 %v1986_v30, %v1984_v29  ;;  %v1983_v34 = vld [vmem:[%s2828_s4 + $0x180] sm:$0xff]  ;;  %v1985_v35 = vld [vmem:[%s2828_s4 + $0x190] sm:$0xff]  ;;  %v1988_v36 = vld [vmem:[%s2828_s4 + $0x1a8] sm:$0xff] }
  0x19   : > { %2082 = vmatprep.subr.bf16.mxu0 %v2081_v38  ;;  %2066 = vmatprep.subr.bf16.mxu1 %v2065_v39  ;;  %v2107_v38 = vpack.c.bf16 %v1985_v35, %v1983_v34  ;;  %v1987_v42 = vld [vmem:[%s2828_s4 + $0x1a0] sm:$0xff]  ;;  %v1989_v43 = vld [vmem:[%s2828_s4 + $0x1b0] sm:$0xff]  ;;  %v1992_v45 = vld [vmem:[%s2828_s4 + $0x1c8] sm:$0xff] }
  0x1a   : > { %1086 = vrot.lane.b32.xlu0 %v2298_v20, %s2161_s11  ;;  %v1993_v50 = vld [vmem:[%s2828_s4 + $0x1d0] sm:$0xff]  ;;  %v1996_v51 = vld [vmem:[%s2828_s4 + $0x1e8] sm:$0xff]  ;;  %v1995_v54 = vld [vmem:[%s2828_s4 + $0x1e0] sm:$0xff] }
  0x1b   : > { %1061 = vrot.lane.b32.xlu1 %v2298_v20, %s2162_s12  ;;  %v1070_v2 = vld [vmem:[%s2829_s5] ss:$8 sm:$0x3]  ;;  %v2000_v6 = vld [vmem:[%s2829_s5 + $0x1] ss:$8 sm:$0x3] }
  0x1c   : > { %2084 = vmatpush1.bf16.msra.mxu0 %v2083_v46  ;;  %2068 = vmatpush1.bf16.msra.mxu1 %v2067_v47  ;;  %v1994_v46 = vld [vmem:[%s2828_s4 + $0x1d8] sm:$0xff]  ;;  %v2111_v47 = vpack.c.bf16 %v1989_v43, %v1987_v42 }
  0x1d   : > { %2086 = vmatprep.subr.bf16.mxu0 %v2085_v48  ;;  %2070 = vmatprep.subr.bf16.mxu1 %v2069_v49  ;;  %v2113_v48 = vpack.c.bf16 %v1994_v46, %v1992_v45  ;;  %v1991_v49 = vld [vmem:[%s2828_s4 + $0x1c0] sm:$0xff] }
  0x1e   : > { %1142 = vrot.lane.b32.xlu0 %v2307_v24, %s2160_s30  ;;  %v2005_v46 = vld [vmem:[%s2829_s5 + $0x7] ss:$8 sm:$0x3] }
  0x1f   : > { %1088 = vrot.lane.b32.xlu1 %v2307_v24, %s2161_s11 }
  0x20   : > { %2088 = vmatpush1.bf16.msra.mxu0 %v2087_v52  ;;  %2072 = vmatpush1.bf16.msra.mxu1 %v2071_v55  ;;  %v1998_v52 = vld [vmem:[%s2828_s4 + $0x1f8] sm:$0xff]  ;;  %v1997_v55 = vld [vmem:[%s2828_s4 + $0x1f0] sm:$0xff] }
  0x21   : > { %2047 = vmatprep.subr.mxu0 %v2157_v0  ;;  %2052 = vmatprep.subr.mxu1 %v2157_v0  ;;  %v2117_v53 = vpack.c.bf16 %v1998_v52, %v1996_v51  ;;  %v2119_v57 = vpack.c.bf16 %v1997_v55, %v1995_v54  ;;  %v2004_v54 = vld [vmem:[%s2829_s5 + $0x6] ss:$8 sm:$0x3] }
  0x22   : > { %1063 = vrot.lane.b32.xlu0 %v2307_v24, %s2162_s12 }
  0x23   : > { %1116 = vrot.lane.b32.xlu1 %v2298_v20, %s2163_s17 }
  0x26   : > { %1118 = vrot.lane.b32.xlu0 %v2307_v24, %s2163_s17 }
  0x27   : > { %1172 = vrot.lane.b32.xlu1 %v2298_v20, %s2164_s18 }
  0x2a   : > { %1174 = vrot.lane.b32.xlu0 %v2307_v24, %s2164_s18 }
  0x2b   : > { %1226 = vrot.lane.b32.xlu1 %v2298_v20, %s2165_s15 }
  0x2e   : > { %1228 = vrot.lane.b32.xlu0 %v2307_v24, %s2165_s15 }
  0x2f   : > { %1202 = vrot.lane.b32.xlu1 %v2298_v20, %s2166_s19 }
  0x32   : > { %1204 = vrot.lane.b32.xlu0 %v2307_v24, %s2166_s19 }
  0x33   : > { %1256 = vrot.lane.b32.xlu1 %v2298_v20, %s2167_s20  ;;  %v1990_v20 = vld [vmem:[%s2828_s4 + $0x1b8] sm:$0xff] }
  0x34   : > { %v2109_v41 = vpack.c.bf16 %v1990_v20, %v1988_v36  ;;  %v2003_v20 = vld [vmem:[%s2829_s5 + $0x5] ss:$8 sm:$0x3] }
  0x36   : > { %1258 = vrot.lane.b32.xlu0 %v2307_v24, %s2167_s20 }
  0x88   : > { %v2376_v56 = vpop.permute.xlu0 %383 }
  0xe5   : > { %v460_v59 = vpop.f32.mrb[0].mxu0  ;;  %v551_v60 = vpop.f32.mrb[0].mxu1 }
  0xe6   : > { %v461_v61 = vadd.f32 %v460_v59, %v2376_v56  ;;  %v552_v62 = vadd.f32 %v551_v60, %v2376_v56  ;;  %v2041_v63 = vpop.f32.mrb[1].mxu0  ;;  %v2046_v1 = vpop.f32.mrb[1].mxu1 }
  0xe7   : > { %v1141_v59 = vpop.permute.xlu1 %1140  ;;  %v1087_v60 = vpop.permute.xlu0 %1086  ;;  %v2002_v1 = vld [vmem:[%s2829_s5 + $0x3] ss:$8 sm:$0x3] }
  0xe8   : > { %1958 = vmatmul.mubr.msk.f32.vlgmr.msra.gmra.mrb[2].mxu1 %vm572_vm3, %v552_v62  ;;  %1959 = vmatmul.mubr.msk.f32.vlgmr.msra.gmra.mrb[2].mxu0 %vm572_vm3, %v461_v61  ;;  %v1065_v61 = vlaneseq }
  0xe9   : > { %2048 = vmatpush3.msk.msra.mxu0 %vm390_vm1, %v2296_v19  ;;  %2049 = vmatprep.mubr.msk.f32.mxu0 %vm2158_vm0, %v2157_v0 }
  0xea   : > { %2053 = vmatpush3.msk.msra.mxu1 %vm390_vm1, %v2296_v19  ;;  %2054 = vmatprep.mubr.msk.f32.mxu1 %vm2158_vm0, %v2157_v0  ;;  %v1973_v19 = vld [vmem:[%s2828_s4 + $0x150] sm:$0xff]  ;;  %v2537_v62 = vand.u32 127, %v1065_v61  ;;  %v1073_v63 = vshrl.u32 %v1065_v61, 7 }
  0xeb   : > { %2090 = vmatprep.subr.bf16.mxu0 %v2089_v4  ;;  %v2099_v21 = vpack.c.bf16 %v1973_v19, %v1971_v18  ;;  %v1062_v3 = vpop.permute.xlu1 %1061  ;;  %v1143_v5 = vpop.permute.xlu0 %1142 }
  0xec   : > { %2050 = vmatmul.mubr.msk.f32.vlgmr.msra.gmra.mrb[4].mxu0 %vm386_vm2, %v1960_v8  ;;  %2055 = vmatmul.mubr.msk.f32.vlgmr.msra.gmra.mrb[4].mxu1 %vm386_vm2, %v1980_v9  ;;  %v2545_v4 = vsub.s32 0, %v1073_v63  ;;  %vm1144_vm4 = vcmp.lt.s32.totalorder %v2537_v62, 1  ;;  %vm1067_vm5 = vcmp.lt.s32.totalorder %v2537_v62, 17  ;;  %vm1090_vm6 = vcmp.lt.s32.totalorder %v2537_v62, 16 }
  0xed   : > { %2092 = vmatpush1.bf16.msra.mxu0 %v2091_v10  ;;  %880 = vmatprep.mubr.f32.mxu0 %v2157_v0  ;;  %v1145_v8 = vsel %vm1144_vm4, %v1141_v59, %v1143_v5  ;;  %v1146_v9 = vsel %vm1144_vm4, %v1143_v5, %v1141_v59  ;;  %v2001_v10 = vld [vmem:[%s2829_s5 + $0x2] ss:$8 sm:$0x3]  ;;  %vm1120_vm7 = vcmp.lt.s32.totalorder %v2537_v62, 15  ;;  %vm1176_vm8 = vcmp.lt.s32.totalorder %v2537_v62, 127 }
  0xee   : > { %2094 = vmatprep.subr.bf16.mxu0 %v2093_v11  ;;  %1565 = vmatprep.mubr.bf16.mxu1 %v2159_v7  ;;  %v1153_v11 = vrot.slane %v2002_v1, %v2545_v4  ;;  %v1075_v13 = vrot.slane %v1070_v2, %v2545_v4  ;;  %v1099_v15 = vrot.slane %v2000_v6, %v2545_v4  ;;  %vm1230_vm9 = vcmp.lt.s32.totalorder %v2537_v62, 112 }
  0xef   : > { %v1064_v19 = vpop.permute.xlu0 %1063  ;;  %v1129_v22 = vrot.slane %v2001_v10, %v2545_v4  ;;  %vm1206_vm10 = vcmp.lt.s32.totalorder %v2537_v62, 113  ;;  %v1215_v5 = vrot.slane %v2004_v54, %v2545_v4  ;;  %vm1260_vm11 = vcmp.lt.s32.totalorder %v2537_v62, 111 }
  0xf0   : > { %v1069_v26 = vsel %vm1067_vm5, %v1064_v19, %v1062_v3 }
  0xf1   : > { %2096 = vmatpush1.bf16.msra.mxu0 %v2095_v16 }
  0xf2   : > { %2098 = vmatprep.subr.bf16.mxu0 %v2097_v17  ;;  %v1160_v17 = vmul.f32 %v1153_v11, %v1146_v9 }
  0xf4   : > { %v1164_v29 = vrot.slane %v1160_v17, 4 }
  0xf5   : > { %2100 = vmatpush1.bf16.msra.mxu0 %v2099_v21  ;;  %v1089_v21 = vpop.permute.xlu1 %1088 }
  0xf6   : > { %2102 = vmatprep.subr.bf16.mxu0 %v2101_v25  ;;  %v1068_v25 = vsel %vm1067_vm5, %v1062_v3, %v1064_v19  ;;  %v1091_v27 = vsel %vm1090_vm6, %v1087_v60, %v1089_v21  ;;  %1168 = vst [vmem:[#allocation2 + $0x10] sm:$0xf0] %v1164_v29 }
  0xf9   : > { %2104 = vmatpush1.bf16.msra.mxu0 %v2103_v28  ;;  %v1092_v28 = vsel %vm1090_vm6, %v1089_v21, %v1087_v60 }
  0xfa   : > { %2106 = vmatprep.subr.bf16.mxu0 %v2105_v31  ;;  %v1082_v31 = vmul.f32 %v1075_v13, %v1069_v26  ;;  %v1106_v35 = vmul.f32 %v1099_v15, %v1092_v28 }
  0xfc   : > { %1084 = vst [vmem:[#allocation2] sm:$0xf] %v1082_v31 }
 0x1bb   : > { %v2486_v32 = vpop.f32.mrb[2].mxu1 }
 0x1bc   : > { %v2488_v33 = vpop.f32.mrb[3].mxu1 }
 0x1bf   : > { %v792_v24 = vpop.f32.mrb[4].mxu0  ;;  %v960_v37 = vpop.f32.mrb[4].mxu1 }
 0x1c0   : > { %v793_v39 = vadd.f32 %v792_v24, %v2376_v56  ;;  %v2051_v40 = vpop.f32.mrb[5].mxu0  ;;  %v2056_v44 = vpop.f32.mrb[5].mxu1  ;;  %v961_v58 = vadd.f32 %v960_v37, %v2376_v56  ;;  %v2547_v56 = vsub.s32 1, %v1073_v63 }
 0x1c1   : > { %v1119_v24 = vpop.permute.xlu0 %1118  ;;  %v1117_v37 = vpop.permute.xlu1 %1116  ;;  %v1185_v44 = vrot.slane %v2003_v20, %v2545_v4 }
 0x1c2   : > { %1979 = vmatmul.mubr.msk.f32.vlgmr.msra.gmra.mrb[2].mxu0 %vm572_vm3, %v793_v39  ;;  %v1157_v12 = vrot.slane %v2002_v1, %v2547_v56  ;;  %v1079_v14 = vrot.slane %v1070_v2, %v2547_v56  ;;  %v1103_v16 = vrot.slane %v2000_v6, %v2547_v56  ;;  %v1133_v23 = vrot.slane %v2001_v10, %v2547_v56  ;;  %v2006_v10 = vld [vmem:[%s2829_s5 + $0x10] ss:$8 sm:$0x3] }
 0x1c3   : > { %2108 = vmatpush1.bf16.msra.mxu0 %v2107_v38  ;;  %1048 = vmatprep.mubr.f32.mxu0 %v2157_v0  ;;  %v2115_v0 = vpack.c.bf16 %v1993_v50, %v1991_v49  ;;  %v1110_v38 = vrot.slane %v1106_v35, 4  ;;  %v1121_v40 = vsel %vm1120_vm7, %v1117_v37, %v1119_v24  ;;  %v1189_v45 = vrot.slane %v2003_v20, %v2547_v56 }
 0x1c4   : > { %2110 = vmatprep.subr.bf16.mxu0 %v2109_v41  ;;  %v1161_v18 = vmul.f32 %v1157_v12, %v1145_v8  ;;  %v1083_v34 = vmul.f32 %v1079_v14, %v1068_v25  ;;  %v1107_v36 = vmul.f32 %v1103_v16, %v1091_v27  ;;  %v1122_v41 = vsel %vm1120_vm7, %v1119_v24, %v1117_v37 }
 0x1c5   : > { %v1136_v42 = vmul.f32 %v1129_v22, %v1122_v41  ;;  %v1137_v43 = vmul.f32 %v1133_v23, %v1121_v40  ;;  %1114 = vst [vmem:[#allocation2] sm:$0xf0] %v1110_v38  ;;  %v1219_v6 = vrot.slane %v2004_v54, %v2547_v56  ;;  %v1269_v22 = vrot.slane %v2006_v10, %v2545_v4  ;;  %v2007_v54 = vld [vmem:[%s2829_s5 + $0x1] ss:$8 sm:$0x3] }
 0x1c6   : > { %v1165_v30 = vrot.slane %v1161_v18, 4  ;;  %1085 = vst [vmem:[#allocation2 + $0x8] sm:$0xf] %v1083_v34  ;;  %v1111_v39 = vrot.slane %v1107_v36, 4  ;;  %v1273_v23 = vrot.slane %v2006_v10, %v2547_v56 }
 0x1c7   : > { %2112 = vmatpush1.bf16.msra.mxu0 %v2111_v47  ;;  %1138 = vst [vmem:[#allocation2 + $0x10] sm:$0xf] %v1136_v42  ;;  %1139 = vst [vmem:[#allocation2 + $0x18] sm:$0xf] %v1137_v43  ;;  %v1175_v47 = vpop.permute.xlu0 %1174 }
 0x1c8   : > { %2114 = vmatprep.subr.bf16.mxu0 %v2113_v48  ;;  %1169 = vst [vmem:[#allocation2 + $0x18] sm:$0xf0] %v1165_v30  ;;  %1115 = vst [vmem:[#allocation2 + $0x8] sm:$0xf0] %v1111_v39  ;;  %v1173_v48 = vpop.permute.xlu1 %1172 }
 0x1c9   : > { %v1177_v49 = vsel %vm1176_vm8, %v1173_v48, %v1175_v47  ;;  %v1178_v50 = vsel %vm1176_vm8, %v1175_v47, %v1173_v48 }
 0x1ca   : > { %v1192_v51 = vmul.f32 %v1185_v44, %v1177_v49  ;;  %v1193_v52 = vmul.f32 %v1189_v45, %v1178_v50 }
 0x1cb   : > { %2116 = vmatpush1.bf16.msra.mxu0 %v2115_v0  ;;  %v1239_v0 = vrot.slane %v2005_v46, %v2545_v4 }
 0x1cc   : > { %2118 = vmatprep.subr.bf16.mxu0 %v2117_v53  ;;  %v1243_v53 = vrot.slane %v2005_v46, %v2547_v56  ;;  %v1196_v55 = vrot.slane %v1192_v51, 4  ;;  %v1227_v59 = vpop.permute.xlu1 %1226  ;;  %v1489_v3 = vld [vmem:[#allocation2] sm:$0xff] }
 0x1cd   : > { %v2008_v46 = vld [vmem:[%s2829_s5 + $0x2] ss:$8 sm:$0x3] }
 0x1ce   : > { %1200 = vst [vmem:[#allocation2 + $0x20] sm:$0xf0] %v1196_v55  ;;  %v1491_v9 = vld [vmem:[#allocation2 + $0x10] sm:$0xff] }
 0x1cf   : > { %2120 = vmatpush1.bf16.msra.mxu0 %v2119_v57  ;;  %v1197_v57 = vrot.slane %v1193_v52, 4  ;;  %v1490_v2 = vld [vmem:[#allocation2 + $0x8] sm:$0xff]  ;;  %v1492_v8 = vld [vmem:[#allocation2 + $0x18] sm:$0xff]  ;;  %v1507_v14 = vpack.c.bf16 %v1491_v9, %v1489_v3  ;;  %v1341_v52 = vrot.slane %v2008_v46, %v2545_v4 }
 0x1d0   : > { %v1508_v13 = vpack.c.bf16 %v1492_v8, %v1490_v2  ;;  %v1203_v16 = vpop.permute.xlu1 %1202  ;;  %v1323_v2 = vrot.slane %v2007_v54, %v2547_v56 }
 0x1d1   : > { %1201 = vst [vmem:[#allocation2 + $0x28] sm:$0xf0] %v1197_v57 }
 0x1d2   : > { %1999 = vmatmul.mubr.msk.f32.vlgmr.msra.gmra.mrb[2].mxu0 %vm572_vm3, %v961_v58  ;;  %v1229_v58 = vpop.permute.xlu0 %1228  ;;  %1533 = vmatprep.subr.bf16.mxu1 %v1508_v13 }
 0x1d3   : > { %v1231_v60 = vsel %vm1230_vm9, %v1227_v59, %v1229_v58  ;;  %v1232_v61 = vsel %vm1230_vm9, %v1229_v58, %v1227_v59  ;;  %1534 = vmatpush1.bf16.msra.mxu1 %v1507_v14 }
 0x1d4   : > { %v1246_v63 = vmul.f32 %v1239_v0, %v1231_v60  ;;  %v1247_v1 = vmul.f32 %v1243_v53, %v1232_v61  ;;  %v1257_v25 = vpop.permute.xlu1 %1256  ;;  %v1345_v0 = vrot.slane %v2008_v46, %v2547_v56 }
 0x1d5   : > { %v1493_v36 = vld [vmem:[#allocation2 + $0x20] sm:$0xff] }
 0x1d6   : > { %v1250_v11 = vrot.slane %v1246_v63, 4  ;;  %v1251_v12 = vrot.slane %v1247_v1, 4  ;;  %v1205_v15 = vpop.permute.xlu0 %1204  ;;  %v1319_v1 = vrot.slane %v2007_v54, %v2545_v4 }
 0x1d7   : > { %v1207_v17 = vsel %vm1206_vm10, %v1203_v16, %v1205_v15  ;;  %v1208_v18 = vsel %vm1206_vm10, %v1205_v15, %v1203_v16 }
 0x1d8   : > { %1254 = vst [vmem:[#allocation2 + $0x30] sm:$0xf0] %v1250_v11  ;;  %1255 = vst [vmem:[#allocation2 + $0x38] sm:$0xf0] %v1251_v12  ;;  %v1222_v19 = vmul.f32 %v1215_v5, %v1207_v17  ;;  %v1223_v21 = vmul.f32 %v1219_v6, %v1208_v18  ;;  %v1494_v31 = vld [vmem:[#allocation2 + $0x28] sm:$0xff] }
 0x1d9   : > { %v2011_v5 = vld [vmem:[%s2829_s5 + $0x6] ss:$8 sm:$0x3]  ;;  %v2009_v17 = vld [vmem:[%s2829_s5 + $0x3] ss:$8 sm:$0x3] }
 0x1da   : > { %1224 = vst [vmem:[#allocation2 + $0x30] sm:$0xf] %v1222_v19  ;;  %1225 = vst [vmem:[#allocation2 + $0x38] sm:$0xf] %v1223_v21  ;;  %v1259_v26 = vpop.permute.xlu0 %1258  ;;  %v1421_v14 = vrot.slane %v2011_v5, %v2545_v4  ;;  %v1425_v15 = vrot.slane %v2011_v5, %v2547_v56 }
 0x1db   : > { %v1261_v27 = vsel %vm1260_vm11, %v1257_v25, %v1259_v26  ;;  %v1262_v28 = vsel %vm1260_vm11, %v1259_v26, %v1257_v25  ;;  %v1369_v25 = vrot.slane %v2009_v17, %v2545_v4  ;;  %v1373_v26 = vrot.slane %v2009_v17, %v2547_v56 }
 0x1dc   : > { %v1276_v29 = vmul.f32 %v1269_v22, %v1261_v27  ;;  %v1277_v30 = vmul.f32 %v1273_v23, %v1262_v28  ;;  %v2010_v28 = vld [vmem:[%s2829_s5 + $0x5] ss:$8 sm:$0x3] }
 0x1de   : > { %1278 = vst [vmem:[#allocation2 + $0x40] sm:$0xf] %v1276_v29  ;;  %1279 = vst [vmem:[#allocation2 + $0x48] sm:$0xf] %v1277_v30 }
 0x1e1   : > { %v1496_v34 = vld [vmem:[#allocation2 + $0x38] sm:$0xff]  ;;  %v1495_v20 = vld [vmem:[#allocation2 + $0x30] sm:$0xff] }
 0x1e2   : > { %v1510_v35 = vpack.c.bf16 %v1496_v34, %v1494_v31  ;;  %v1509_v24 = vpack.c.bf16 %v1495_v20, %v1493_v36 }
 0x1e4   : > { %1535 = vmatprep.subr.bf16.mxu1 %v1510_v35 }
 0x1e5   : > { %1536 = vmatpush1.bf16.msra.mxu1 %v1509_v24  ;;  %v1399_v24 = vrot.slane %v2010_v28, %v2545_v4 }
 0x2a5   : > { %v1050_v37 = vpop.f32.mrb[2].mxu0 }
 0x2a6   : > { %v2121_v38 = vadd.f32 %v1050_v37, %v2486_v32  ;;  %v1052_v39 = vpop.f32.mrb[3].mxu0  ;;  %v1517_v32 = vld [vmem:[%s2831_s7] sm:$0xf]  ;;  %v1403_v37 = vrot.slane %v2010_v28, %v2547_v56 }
 0x2a7   : > { %v2122_v40 = vadd.f32 %v1052_v39, %v2488_v33  ;;  %v1286_v33 = vld [vmem:[%s2829_s5] ss:$8 sm:$0x3]  ;;  %v2013_v39 = vld [vmem:[%s2829_s5 + $0x10] ss:$8 sm:$0x3] }
 0x2a8   : > { %1280 = vrot.lane.b32.xlu1 %v2121_v38, %s2162_s12  ;;  %v1382_v41 = vrot.slane %v2121_v38, 4  ;;  %v1291_v43 = vrot.slane %v1286_v33, %v2545_v4  ;;  %v1295_v44 = vrot.slane %v1286_v33, %v2547_v56 }
 0x2a9   : > { %1282 = vrot.lane.b32.xlu0 %v2122_v40, %s2162_s12  ;;  %v1383_v42 = vrot.slane %v2122_v40, 4 }
 0x2aa   : > { %1386 = vst [vmem:[#allocation2 + $0x60] sm:$0xf0] %v1382_v41 }
 0x2ab   : > { %1387 = vst [vmem:[#allocation2 + $0x68] sm:$0xf0] %v1383_v42 }
 0x2ac   : > { %1330 = vrot.lane.b32.xlu1 %v2121_v38, %s2163_s17 }
 0x2ad   : > { %1332 = vrot.lane.b32.xlu0 %v2122_v40, %s2163_s17 }
 0x2b0   : > { %1308 = vrot.lane.b32.xlu1 %v2121_v38, %s2161_s11 }
 0x2b1   : > { %1310 = vrot.lane.b32.xlu0 %v2122_v40, %s2161_s11 }
 0x2b4   : > { %1410 = vrot.lane.b32.xlu1 %v2121_v38, %s2166_s19 }
 0x2b5   : > { %1412 = vrot.lane.b32.xlu0 %v2122_v40, %s2166_s19 }
 0x2b8   : > { %1358 = vrot.lane.b32.xlu1 %v2121_v38, %s2160_s30 }
 0x2b9   : > { %1360 = vrot.lane.b32.xlu0 %v2122_v40, %s2160_s30 }
 0x2bc   : > { %1388 = vrot.lane.b32.xlu1 %v2121_v38, %s2164_s18 }
 0x2bd   : > { %1390 = vrot.lane.b32.xlu0 %v2122_v40, %s2164_s18 }
 0x2c0   : > { %1460 = vrot.lane.b32.xlu1 %v2121_v38, %s2167_s20 }
 0x2c1   : > { %1462 = vrot.lane.b32.xlu0 %v2122_v40, %s2167_s20 }
 0x2c4   : > { %1438 = vrot.lane.b32.xlu1 %v2121_v38, %s2165_s15 }
 0x2c5   : > { %1440 = vrot.lane.b32.xlu0 %v2122_v40, %s2165_s15 }
 0x2c8   : > { %1520 = vperm.xlu1 %2147, %v1517_v32  }
 0x31a   : > { %v1281_v45 = vpop.permute.xlu1 %1280 }
 0x31b   : > { %v1283_v47 = vpop.permute.xlu0 %1282 }
 0x31c   : > { %v1284_v48 = vsel %vm1067_vm5, %v1281_v45, %v1283_v47  ;;  %v1285_v49 = vsel %vm1067_vm5, %v1283_v47, %v1281_v45 }
 0x31d   : > { %v1298_v50 = vmul.f32 %v1291_v43, %v1285_v49  ;;  %v1299_v51 = vmul.f32 %v1295_v44, %v1284_v48  ;;  %v1471_v49 = vrot.slane %v2013_v39, %v2545_v4 }
 0x31e   : > { %v1331_v53 = vpop.permute.xlu1 %1330 }
 0x31f   : > { %v1302_v55 = vrot.slane %v1298_v50, 4  ;;  %v1303_v57 = vrot.slane %v1299_v51, 4  ;;  %v1333_v58 = vpop.permute.xlu0 %1332  ;;  %v1475_v50 = vrot.slane %v2013_v39, %v2547_v56 }
 0x320   : > { %v1334_v59 = vsel %vm1120_vm7, %v1331_v53, %v1333_v58  ;;  %v1335_v60 = vsel %vm1120_vm7, %v1333_v58, %v1331_v53 }
 0x321   : > { %1306 = vst [vmem:[#allocation2 + $0x40] sm:$0xf0] %v1302_v55  ;;  %1307 = vst [vmem:[#allocation2 + $0x48] sm:$0xf0] %v1303_v57  ;;  %v1348_v61 = vmul.f32 %v1341_v52, %v1335_v60  ;;  %v1349_v63 = vmul.f32 %v1345_v0, %v1334_v59 }
 0x322   : > { %v1309_v3 = vpop.permute.xlu1 %1308  ;;  %v2012_v52 = vld [vmem:[%s2829_s5 + $0x7] ss:$8 sm:$0x3] }
 0x323   : > { %v1352_v6 = vrot.slane %v1348_v61, 4  ;;  %v1353_v8 = vrot.slane %v1349_v63, 4  ;;  %v1311_v9 = vpop.permute.xlu0 %1310  ;;  %v1449_v58 = vrot.slane %v2012_v52, %v2545_v4  ;;  %v1453_v59 = vrot.slane %v2012_v52, %v2547_v56 }
 0x324   : > { %v1312_v10 = vsel %vm1090_vm6, %v1309_v3, %v1311_v9  ;;  %v1313_v11 = vsel %vm1090_vm6, %v1311_v9, %v1309_v3 }
 0x325   : > { %1356 = vst [vmem:[#allocation2 + $0x50] sm:$0xf0] %v1352_v6  ;;  %1357 = vst [vmem:[#allocation2 + $0x58] sm:$0xf0] %v1353_v8  ;;  %v1326_v12 = vmul.f32 %v1319_v1, %v1313_v11  ;;  %v1327_v13 = vmul.f32 %v1323_v2, %v1312_v10 }
 0x326   : > { %v1411_v16 = vpop.permute.xlu1 %1410 }
 0x327   : > { %1328 = vst [vmem:[#allocation2 + $0x50] sm:$0xf] %v1326_v12  ;;  %1329 = vst [vmem:[#allocation2 + $0x58] sm:$0xf] %v1327_v13  ;;  %v1413_v18 = vpop.permute.xlu0 %1412 }
 0x328   : > { %v1414_v19 = vsel %vm1206_vm10, %v1411_v16, %v1413_v18  ;;  %v1415_v21 = vsel %vm1206_vm10, %v1413_v18, %v1411_v16  ;;  %v1498_v38 = vld [vmem:[#allocation2 + $0x48] sm:$0xff]  ;;  %v1497_v42 = vld [vmem:[#allocation2 + $0x40] sm:$0xff] }
 0x329   : > { %v1428_v22 = vmul.f32 %v1421_v14, %v1414_v19  ;;  %v1429_v23 = vmul.f32 %v1425_v15, %v1415_v21  ;;  %v1488_v19 = vld [vmem:[%s2830_s6] sm:$0x3] }
 0x32a   : > { %v1359_v27 = vpop.permute.xlu1 %1358 }
 0x32b   : > { %v1432_v29 = vrot.slane %v1428_v22, 4  ;;  %v1433_v30 = vrot.slane %v1429_v23, 4  ;;  %v1361_v31 = vpop.permute.xlu0 %1360 }
 0x32c   : > { %v1362_v34 = vsel %vm1144_vm4, %v1359_v27, %v1361_v31  ;;  %v1363_v35 = vsel %vm1144_vm4, %v1361_v31, %v1359_v27  ;;  %v2016_v31 = vld [vmem:[%s2829_s5 + $0x1] ss:$8 sm:$0x3] }
 0x32d   : > { %1436 = vst [vmem:[#allocation2 + $0x70] sm:$0xf0] %v1432_v29  ;;  %1437 = vst [vmem:[#allocation2 + $0x78] sm:$0xf0] %v1433_v30  ;;  %v1376_v36 = vmul.f32 %v1369_v25, %v1363_v35  ;;  %v1377_v20 = vmul.f32 %v1373_v26, %v1362_v34  ;;  %v1609_v34 = vrot.slane %v2016_v31, %v2545_v4 }
 0x32e   : > { %v1389_v40 = vpop.permute.xlu1 %1388  ;;  %v1500_v41 = vld [vmem:[#allocation2 + $0x58] sm:$0xff]  ;;  %v1499_v32 = vld [vmem:[#allocation2 + $0x50] sm:$0xff]  ;;  %v1613_v35 = vrot.slane %v2016_v31, %v2547_v56 }
 0x32f   : > { %1378 = vst [vmem:[#allocation2 + $0x60] sm:$0xf] %v1376_v36  ;;  %1379 = vst [vmem:[#allocation2 + $0x68] sm:$0xf] %v1377_v20  ;;  %v1391_v33 = vpop.permute.xlu0 %1390  ;;  %v1512_v43 = vpack.c.bf16 %v1500_v41, %v1498_v38  ;;  %v1511_v44 = vpack.c.bf16 %v1499_v32, %v1497_v42 }
 0x330   : > { %v1392_v45 = vsel %vm1176_vm8, %v1389_v40, %v1391_v33  ;;  %v1393_v46 = vsel %vm1176_vm8, %v1391_v33, %v1389_v40  ;;  %v2018_v20 = vld [vmem:[%s2829_s5 + $0x3] ss:$8 sm:$0x3]  ;;  %v1582_v33 = vld [vmem:[%s2829_s5] ss:$8 sm:$0x3] }
 0x331   : > { %v1406_v47 = vmul.f32 %v1399_v24, %v1392_v45  ;;  %v1407_v48 = vmul.f32 %v1403_v37, %v1393_v46  ;;  %1537 = vmatprep.subr.bf16.mxu1 %v1512_v43  ;;  %v1659_v41 = vrot.slane %v2018_v20, %v2545_v4  ;;  %v1663_v42 = vrot.slane %v2018_v20, %v2547_v56 }
 0x332   : > { %v1461_v51 = vpop.permute.xlu1 %1460  ;;  %1538 = vmatpush1.bf16.msra.mxu1 %v1511_v44 }
 0x333   : > { %1408 = vst [vmem:[#allocation2 + $0x70] sm:$0xf] %v1406_v47  ;;  %1409 = vst [vmem:[#allocation2 + $0x78] sm:$0xf] %v1407_v48  ;;  %v1463_v0 = vpop.permute.xlu0 %1462 }
 0x334   : > { %v1464_v53 = vsel %vm1260_vm11, %v1461_v51, %v1463_v0  ;;  %v1465_v54 = vsel %vm1260_vm11, %v1463_v0, %v1461_v51  ;;  %v1591_v51 = vrot.slane %v1582_v33, %v2547_v56  ;;  %v2017_v0 = vld [vmem:[%s2829_s5 + $0x2] ss:$8 sm:$0x3] }
 0x335   : > { %v1478_v55 = vmul.f32 %v1471_v49, %v1464_v53  ;;  %v1479_v57 = vmul.f32 %v1475_v50, %v1465_v54  ;;  %v1587_v50 = vrot.slane %v1582_v33, %v2545_v4 }
 0x336   : > { %v1439_v60 = vpop.permute.xlu1 %1438  ;;  %v1502_v8 = vld [vmem:[#allocation2 + $0x68] sm:$0xff]  ;;  %v1501_v10 = vld [vmem:[#allocation2 + $0x60] sm:$0xff] }
 0x337   : > { %v1482_v61 = vrot.slane %v1478_v55, 4  ;;  %v1483_v63 = vrot.slane %v1479_v57, 4  ;;  %v1441_v1 = vpop.permute.xlu0 %1440 }
 0x338   : > { %v1442_v2 = vsel %vm1230_vm9, %v1439_v60, %v1441_v1  ;;  %v1443_v3 = vsel %vm1230_vm9, %v1441_v1, %v1439_v60 }
 0x339   : > { %1486 = vst [vmem:[#allocation2 + $0x80] sm:$0xf0] %v1482_v61  ;;  %1487 = vst [vmem:[#allocation2 + $0x88] sm:$0xf0] %v1483_v63  ;;  %v1456_v5 = vmul.f32 %v1449_v58, %v1442_v2  ;;  %v1457_v6 = vmul.f32 %v1453_v59, %v1443_v3  ;;  %v1637_v61 = vrot.slane %v2017_v0, %v2545_v4 }
 0x33a   : > { %v1504_v9 = vld [vmem:[#allocation2 + $0x78] sm:$0xff]  ;;  %v1503_v11 = vld [vmem:[#allocation2 + $0x70] sm:$0xff]  ;;  %v1641_v63 = vrot.slane %v2017_v0, %v2547_v56  ;;  %v2019_v2 = vld [vmem:[%s2829_s5 + $0x5] ss:$8 sm:$0x3] }
 0x33b   : > { %1458 = vst [vmem:[#allocation2 + $0x80] sm:$0xf] %v1456_v5  ;;  %1459 = vst [vmem:[#allocation2 + $0x88] sm:$0xf] %v1457_v6  ;;  %v1514_v12 = vpack.c.bf16 %v1504_v9, %v1502_v8  ;;  %v1513_v13 = vpack.c.bf16 %v1503_v11, %v1501_v10  ;;  %v1689_v10 = vrot.slane %v2019_v2, %v2545_v4 }
 0x33c   : > { %v1693_v11 = vrot.slane %v2019_v2, %v2547_v56 }
 0x33d   : > { %1539 = vmatprep.subr.bf16.mxu1 %v1514_v12 }
 0x33e   : > { %1540 = vmatpush1.bf16.msra.mxu1 %v1513_v13  ;;  %v2021_v13 = vld [vmem:[%s2829_s5 + $0x7] ss:$8 sm:$0x3] }
 0x342   : > { %v1506_v14 = vld [vmem:[#allocation2 + $0x88] sm:$0xff]  ;;  %v1505_v15 = vld [vmem:[#allocation2 + $0x80] sm:$0xff] }
 0x343   : > { %v1516_v16 = vpack.c.bf16 %v1506_v14, %v1506_v14  ;;  %v1515_v17 = vpack.c.bf16 %v1505_v15, %v1505_v15 }
 0x345   : > { %2014 = vmatprep.subr.msk.bf16.mxu1 %vm390_vm1, %v1516_v16  ;;  %v1528_v18 = vsel %vm390_vm1, %v1515_v17, 0 }
 0x346   : > { %1542 = vmatpush1.bf16.msra.mxu1 %v1528_v18 }
 0x347   : > { %v1521_v21 = vpop.permute.xlu1 %1520 }
 0x349   : > { %2015 = vmatmul.mubr.msk.bf16.vlgmr.msra.gmra.mrb[8].mxu1 %vm1523_vm12, %v1488_v19  ;;  %v1739_v19 = vrot.slane %v2021_v13, %v2545_v4 }
 0x34a   : > { %1844 = vmatprep.mubr.bf16.mxu1 %v2159_v7  ;;  %v1795_v7 = vld [vmem:[%s2833_s9] sm:$0xf] }
 0x41c   : > { %v1567_v22 = vpop.f32.mrb[8].mxu1 }
 0x41d   : > { %v1568_v23 = vadd.f32 %v1567_v22, %v1521_v21  ;;  %v1569_v25 = vpop.f32.mrb[9].mxu1 }
 0x41e   : > { %v1570_v26 = vadd.f32 %v1569_v25, %v1521_v21  ;;  %v1571_v27 = vpop.f32.mrb[10].mxu1  ;;  %v1743_v21 = vrot.slane %v2021_v13, %v2547_v56 }
 0x41f   : > { %v1574_v28 = vmax.f32 %v1568_v23, 0.0  ;;  %v1572_v29 = vpop.f32.mrb[11].mxu1  ;;  %v2020_v23 = vld [vmem:[%s2829_s5 + $0x6] ss:$8 sm:$0x3] }
 0x420   : > { %v1575_v30 = vmax.f32 %v1570_v26, 0.0  ;;  %v1717_v31 = vrot.slane %v2020_v23, %v2545_v4 }
 0x421   : > { %1676 = vst [vmem:[#allocation3 + $0x20] sm:$0xf] %v1574_v28  ;;  %1598 = vrot.lane.b32.xlu0 %v1574_v28, %s2161_s11 }
 0x422   : > { %1677 = vst [vmem:[#allocation3 + $0x28] sm:$0xf] %v1575_v30  ;;  %1600 = vrot.lane.b32.xlu1 %v1575_v30, %s2161_s11 }
 0x425   : > { %1648 = vrot.lane.b32.xlu0 %v1574_v28, %s2160_s30 }
 0x426   : > { %1650 = vrot.lane.b32.xlu1 %v1575_v30, %s2160_s30 }
 0x429   : > { %1576 = vrot.lane.b32.xlu0 %v1574_v28, %s2162_s12 }
 0x42a   : > { %1578 = vrot.lane.b32.xlu1 %v1575_v30, %s2162_s12  ;;  %s2836_s12 = sshll.u32 %s2838_s14, 3 }
 0x42d   : > { %1626 = vrot.lane.b32.xlu0 %v1574_v28, %s2163_s17 }
 0x42e   : > { %1628 = vrot.lane.b32.xlu1 %v1575_v30, %s2163_s17 }
 0x431   : > { %1678 = vrot.lane.b32.xlu0 %v1574_v28, %s2164_s18 }
 0x432   : > { %1680 = vrot.lane.b32.xlu1 %v1575_v30, %s2164_s18 }
 0x435   : > { %1728 = vrot.lane.b32.xlu0 %v1574_v28, %s2165_s15 }
 0x436   : > { %1730 = vrot.lane.b32.xlu1 %v1575_v30, %s2165_s15  ;;  %s376_s15 = scalar_lea.vmem %s2834_s10, %s2836_s12 }
 0x439   : > { %1706 = vrot.lane.b32.xlu0 %v1574_v28, %s2166_s19 }
 0x43a   : > { %1708 = vrot.lane.b32.xlu1 %v1575_v30, %s2166_s19 }
 0x43d   : > { %1756 = vrot.lane.b32.xlu0 %v1574_v28, %s2167_s20 }
 0x43e   : > { %1758 = vrot.lane.b32.xlu1 %v1575_v30, %s2167_s20 }
 0x441   : > { %1798 = vperm.xlu0 %2146, %v1795_v7  }
 0x493   : > { %v1599_v36 = vpop.permute.xlu0 %1598 }
 0x494   : > { %v1601_v24 = vpop.permute.xlu1 %1600 }
 0x495   : > { %v1602_v37 = vsel %vm1090_vm6, %v1599_v36, %v1601_v24  ;;  %v1603_v38 = vsel %vm1090_vm6, %v1601_v24, %v1599_v36  ;;  %v2022_v36 = vld [vmem:[%s2829_s5 + $0x10] ss:$8 sm:$0x3] }
 0x496   : > { %v1616_v39 = vmul.f32 %v1609_v34, %v1603_v38  ;;  %v1617_v40 = vmul.f32 %v1613_v35, %v1602_v37  ;;  %v1721_v34 = vrot.slane %v2020_v23, %v2547_v56 }
 0x497   : > { %v1649_v32 = vpop.permute.xlu0 %1648 }
 0x498   : > { %v1620_v43 = vrot.slane %v1616_v39, 4  ;;  %v1621_v44 = vrot.slane %v1617_v40, 4  ;;  %v1651_v45 = vpop.permute.xlu1 %1650 }
 0x499   : > { %v1652_v46 = vsel %vm1144_vm4, %v1649_v32, %v1651_v45  ;;  %v1653_v47 = vsel %vm1144_vm4, %v1651_v45, %v1649_v32 }
 0x49a   : > { %1624 = vst [vmem:[#allocation3] sm:$0xf0] %v1620_v43  ;;  %1625 = vst [vmem:[#allocation3 + $0x8] sm:$0xf0] %v1621_v44  ;;  %v1666_v48 = vmul.f32 %v1659_v41, %v1653_v47  ;;  %v1667_v49 = vmul.f32 %v1663_v42, %v1652_v46  ;;  %v1767_v46 = vrot.slane %v2022_v36, %v2545_v4 }
 0x49b   : > { %v1577_v52 = vpop.permute.xlu0 %1576  ;;  %v1771_v47 = vrot.slane %v2022_v36, %v2547_v56 }
 0x49c   : > { %v1670_v53 = vrot.slane %v1666_v48, 4  ;;  %v1671_v54 = vrot.slane %v1667_v49, 4  ;;  %v1579_v55 = vpop.permute.xlu1 %1578 }
 0x49d   : > { %v1580_v57 = vsel %vm1067_vm5, %v1577_v52, %v1579_v55  ;;  %v1581_v58 = vsel %vm1067_vm5, %v1579_v55, %v1577_v52 }
 0x49e   : > { %1674 = vst [vmem:[#allocation3 + $0x10] sm:$0xf0] %v1670_v53  ;;  %1675 = vst [vmem:[#allocation3 + $0x18] sm:$0xf0] %v1671_v54  ;;  %v1594_v59 = vmul.f32 %v1587_v50, %v1581_v58  ;;  %v1595_v60 = vmul.f32 %v1591_v51, %v1580_v57 }
 0x49f   : > { %v1627_v1 = vpop.permute.xlu0 %1626 }
 0x4a0   : > { %1596 = vst [vmem:[#allocation3] sm:$0xf] %v1594_v59  ;;  %1597 = vst [vmem:[#allocation3 + $0x8] sm:$0xf] %v1595_v60  ;;  %v1629_v3 = vpop.permute.xlu1 %1628 }
 0x4a1   : > { %v1630_v5 = vsel %vm1120_vm7, %v1627_v1, %v1629_v3  ;;  %v1631_v6 = vsel %vm1120_vm7, %v1629_v3, %v1627_v1 }
 0x4a2   : > { %v1644_v8 = vmul.f32 %v1637_v61, %v1631_v6  ;;  %v1645_v9 = vmul.f32 %v1641_v63, %v1630_v5  ;;  %v1778_v63 = vld [vmem:[%s2832_s8] sm:$0x3] }
 0x4a3   : > { %v1679_v12 = vpop.permute.xlu0 %1678 }
 0x4a4   : > { %1646 = vst [vmem:[#allocation3 + $0x10] sm:$0xf] %v1644_v8  ;;  %1647 = vst [vmem:[#allocation3 + $0x18] sm:$0xf] %v1645_v9  ;;  %v1681_v14 = vpop.permute.xlu1 %1680 }
 0x4a5   : > { %v1682_v15 = vsel %vm1176_vm8, %v1679_v12, %v1681_v14  ;;  %v1683_v16 = vsel %vm1176_vm8, %v1681_v14, %v1679_v12 }
 0x4a6   : > { %v1696_v17 = vmul.f32 %v1689_v10, %v1682_v15  ;;  %v1697_v18 = vmul.f32 %v1693_v11, %v1683_v16 }
 0x4a7   : > { %v1729_v22 = vpop.permute.xlu0 %1728  ;;  %v1780_v35 = vld [vmem:[#allocation3 + $0x8] sm:$0xff]  ;;  %v1779_v37 = vld [vmem:[#allocation3] sm:$0xff] }
 0x4a8   : > { %v1700_v25 = vrot.slane %v1696_v17, 4  ;;  %v1701_v26 = vrot.slane %v1697_v18, 4  ;;  %v1731_v27 = vpop.permute.xlu1 %1730 }
 0x4a9   : > { %v1732_v28 = vsel %vm1230_vm9, %v1729_v22, %v1731_v27  ;;  %v1733_v29 = vsel %vm1230_vm9, %v1731_v27, %v1729_v22 }
 0x4aa   : > { %1704 = vst [vmem:[#allocation3 + $0x20] sm:$0xf0] %v1700_v25  ;;  %1705 = vst [vmem:[#allocation3 + $0x28] sm:$0xf0] %v1701_v26  ;;  %v1746_v30 = vmul.f32 %v1739_v19, %v1732_v28  ;;  %v1747_v7 = vmul.f32 %v1743_v21, %v1733_v29 }
 0x4ab   : > { %v1707_v20 = vpop.permute.xlu0 %1706  ;;  %v1782_v24 = vld [vmem:[#allocation3 + $0x18] sm:$0xff]  ;;  %v1781_v38 = vld [vmem:[#allocation3 + $0x10] sm:$0xff] }
 0x4ac   : > { %v1750_v39 = vrot.slane %v1746_v30, 4  ;;  %v1751_v40 = vrot.slane %v1747_v7, 4  ;;  %v1709_v41 = vpop.permute.xlu1 %1708  ;;  %v1790_v42 = vpack.c.bf16 %v1782_v24, %v1780_v35  ;;  %v1789_v32 = vpack.c.bf16 %v1781_v38, %v1779_v37 }
 0x4ad   : > { %v1710_v33 = vsel %vm1206_vm10, %v1707_v20, %v1709_v41  ;;  %v1711_v43 = vsel %vm1206_vm10, %v1709_v41, %v1707_v20 }
 0x4ae   : > { %1754 = vst [vmem:[#allocation3 + $0x30] sm:$0xf0] %v1750_v39  ;;  %1755 = vst [vmem:[#allocation3 + $0x38] sm:$0xf0] %v1751_v40  ;;  %v1724_v44 = vmul.f32 %v1717_v31, %v1710_v33  ;;  %v1725_v45 = vmul.f32 %v1721_v34, %v1711_v43  ;;  %1812 = vmatprep.subr.bf16.mxu1 %v1790_v42 }
 0x4af   : > { %1813 = vmatpush1.bf16.msra.mxu1 %v1789_v32  ;;  %v1757_v48 = vpop.permute.xlu0 %1756 }
 0x4b0   : > { %1726 = vst [vmem:[#allocation3 + $0x30] sm:$0xf] %v1724_v44  ;;  %1727 = vst [vmem:[#allocation3 + $0x38] sm:$0xf] %v1725_v45  ;;  %v1759_v49 = vpop.permute.xlu1 %1758 }
 0x4b1   : > { %v1760_v50 = vsel %vm1260_vm11, %v1757_v48, %v1759_v49  ;;  %v1761_v51 = vsel %vm1260_vm11, %v1759_v49, %v1757_v48  ;;  %v1784_v53 = vld [vmem:[#allocation3 + $0x28] sm:$0xff]  ;;  %v1783_v4 = vld [vmem:[#allocation3 + $0x20] sm:$0xff] }
 0x4b2   : > { %v1774_v52 = vmul.f32 %v1767_v46, %v1760_v50  ;;  %v1775_v0 = vmul.f32 %v1771_v47, %v1761_v51 }
 0x4b4   : > { %1776 = vst [vmem:[#allocation3 + $0x40] sm:$0xf] %v1774_v52  ;;  %1777 = vst [vmem:[#allocation3 + $0x48] sm:$0xf] %v1775_v0 }
 0x4b7   : > { %v1786_v54 = vld [vmem:[#allocation3 + $0x38] sm:$0xff]  ;;  %v1785_v55 = vld [vmem:[#allocation3 + $0x30] sm:$0xff] }
 0x4b8   : > { %v1792_v56 = vpack.c.bf16 %v1786_v54, %v1784_v53  ;;  %v1791_v57 = vpack.c.bf16 %v1785_v55, %v1783_v4 }
 0x4ba   : > { %1814 = vmatprep.subr.bf16.mxu1 %v1792_v56 }
 0x4bb   : > { %1815 = vmatpush1.bf16.msra.mxu1 %v1791_v57  ;;  %v1788_v58 = vld [vmem:[#allocation3 + $0x48] sm:$0xf]  ;;  %v1787_v59 = vld [vmem:[#allocation3 + $0x40] sm:$0xf] }
 0x4bc   : > { %v1794_v60 = vpack.c.bf16 %v1788_v58, %v1788_v58  ;;  %v1793_v61 = vpack.c.bf16 %v1787_v59, %v1787_v59 }
 0x4be   : > { %2023 = vmatprep.subr.msk.bf16.mxu1 %vm1805_vm13, %v1794_v60  ;;  %v1807_v62 = vsel %vm1805_vm13, %v1793_v61, 0 }
 0x4bf   : > { %1817 = vmatpush1.bf16.msra.mxu1 %v1807_v62 }
 0x4c0   : > { %v1799_v1 = vpop.permute.xlu0 %1798 }
 0x4c2   : > { %2024 = vmatmul.mubr.msk.bf16.vlgmr.msra.gmra.mrb[12].mxu1 %vm1801_vm14, %v1778_v63 }
 0x595   : > { %v1846_v2 = vpop.f32.mrb[12].mxu1 }
 0x596   : > { %v1847_v3 = vadd.f32 %v1846_v2, %v1799_v1  ;;  %v1848_v5 = vpop.f32.mrb[13].mxu1 }
 0x597   : > { %v1849_v6 = vadd.f32 %v1848_v5, %v1799_v1  ;;  %v1850_v8 = vpop.f32.mrb[14].mxu1 }
 0x598   : > { %v1853_v9 = vmax.f32 %v1847_v3, 0.0  ;;  %v1851_v10 = vpop.f32.mrb[15].mxu1 }
 0x599   : > { %v1854_v11 = vmax.f32 %v1849_v6, 0.0 }
 0x59b   : > { %v1857_v12 = vcombine.low %v1853_v9, %v1854_v11 }
 0x59d   : > { %1859 = vst [vmem:[%s376_s15] sm:$0xff] %v1857_v12 }
 0x59e PF: > { %s20_s13 = sadd.s32 1, %s2155_s13  }
 0x59f   : > { %p17_p4 = scmp.ge.s32.totalorder %s20_s13, 4  }
 0x5a1   :  { %19 = sbr.rel (!%p17_p4) target bundleno = 1 (0x1), region = 106 }

</bundles_post_ra>
